<compile_context>
chip_gen: v7x
topology: tpu7x:2x2x1
jax: 0.10.0
libtpu: 0.0.40
codegen_flags: <defaults>
</compile_context>

<pallas_src>
import functools

import jax
import jax.numpy as jnp
from jax import lax
from jax.experimental import pallas as pl
from jax.experimental.pallas import tpu as pltpu

K = 7      # conv kernel size
PAD = 3    # conv padding ("same" for 7x7)


def _round_up(v, m):
    return (v + m - 1) // m * m


def _vmem_capacity_bytes():
    try:
        return int(pltpu.get_tpu_info().vmem_capacity_bytes)
    except Exception:
        return 64 << 20   # conservative fallback (v7x per-core VMEM)


def _choose_cblk(C, S, itemsize):
    """Channel-chunk size for the (1, cblk, S) x block (double-buffered by Pallas)."""
    per_chan = S * itemsize
    budget = max(1 << 20, min(_vmem_capacity_bytes() // 16, 6 << 20))
    if C * per_chan <= budget:
        return C                                    # whole channel axis resident
    cap = max(8, (budget // per_chan) // 8 * 8)     # multiple of 8 (sublane tiling)
    return int(min(cap, _round_up(C, 8)))


def _spatial_attention_kernel(w_ref, hmask_ref, x_ref, o_ref, *scratch,
                              C, W, cblk, ncb):
    # w_ref     : SMEM (2*K*K,)     flattened conv weight (out=1, in=[max, avg], K, K)
    # hmask_ref : VMEM (K, S) f32   per-kw horizontal validity mask (row boundaries)
    # x_ref     : VMEM (1, cblk, S) one channel chunk of one image, spatially flat
    # o_ref     : VMEM (1, 1, S)    flattened attention map (single dense store)
    # scratch   : [mx, sm] (SUB, S) f32 running partials (only when ncb > 1)
    #             [pm, pa] (1, Lp) f32 zero-padded flat max/avg maps
    S = x_ref.shape[-1]
    SUB = min(8, cblk)
    base = 3 * W + PAD                 # interior offset inside the padded flat maps
    if ncb > 1:
        mx_ref, sm_ref, pm_ref, pa_ref = scratch
    else:
        pm_ref, pa_ref = scratch
    cb = pl.program_id(1)

    # ---- running channel max / sum as lane-dense (SUB, S) partials (VPU only) ----
    if ncb > 1:
        @pl.when(cb == 0)
        def _():
            mx_ref[...] = jnp.full(mx_ref.shape, -jnp.inf, jnp.float32)
            sm_ref[...] = jnp.zeros(sm_ref.shape, jnp.float32)
        m8 = mx_ref[...]
        s8 = sm_ref[...]
    else:
        m8 = jnp.full((SUB, S), -jnp.inf, jnp.float32)
        s8 = jnp.zeros((SUB, S), jnp.float32)

    nfull = cblk // SUB
    tail = cblk - nfull * SUB          # only possible in the single-chunk case
    for g in range(nfull):             # static -> fully unrolled straight-line code
        xs = x_ref[0, pl.ds(g * SUB, SUB), :].astype(jnp.float32)
        if ncb > 1 and (ncb - 1) * cblk + (g + 1) * SUB > C:
            # This slab may run past C in the boundary chunk: mask invalid rows.
            ch = cb * cblk + g * SUB + lax.broadcasted_iota(jnp.int32, (SUB, S), 0)
            valid = ch < C
            m8 = jnp.maximum(m8, jnp.where(valid, xs, -jnp.inf))
            s8 = s8 + jnp.where(valid, xs, 0.0)
        else:
            m8 = jnp.maximum(m8, xs)
            s8 = s8 + xs
    if tail:                           # static tail slab (C % 8 != 0, single chunk)
        xs = x_ref[0, pl.ds(nfull * SUB, tail), :].astype(jnp.float32)
        m8 = jnp.maximum(m8, jnp.concatenate(
            [xs, jnp.full((SUB - tail, S), -jnp.inf, jnp.float32)], axis=0))
        s8 = s8 + jnp.concatenate(
            [xs, jnp.zeros((SUB - tail, S), jnp.float32)], axis=0)

    if ncb > 1:
        mx_ref[...] = m8
        sm_ref[...] = s8

    # ---- last chunk: reduce partials, 7x7 conv in flat layout, sigmoid, store ----
    def _finalize():
        mx = jnp.max(m8, axis=0, keepdims=True)                # (1, S) channel max
        av = jnp.sum(s8, axis=0, keepdims=True) * (1.0 / C)    # (1, S) channel mean

        # Zero-padded flat maps: [3W+PAD halo | S interior | 3W+PAD halo].
        # The halos absorb vertical out-of-range taps; horizontal row-crossings are
        # removed by hmask.  Buffers are tiny, so full zero + interior write is fine.
        pm_ref[...] = jnp.zeros(pm_ref.shape, jnp.float32)
        pa_ref[...] = jnp.zeros(pa_ref.shape, jnp.float32)
        pm_ref[pl.ds(0, 1), pl.ds(base, S)] = mx
        pa_ref[pl.ds(0, 1), pl.ds(base, S)] = av

        # out[h*W + w] = sum_{kh,kw} w[kh,kw] * map[(h+kh-3)*W + (w+kw-3)]
        # Vertical tap = flat shift of (kh-3)*W; horizontal tap = flat shift of
        # (kw-3), gated per output column by hmask[kw].  49 taps x 2 maps, fully
        # unrolled; masks applied once per kw column.
        acc = jnp.zeros((1, S), jnp.float32)
        for kw in range(K):
            dx = kw - PAD
            tap = jnp.zeros((1, S), jnp.float32)
            for kh in range(K):
                off = base + (kh - PAD) * W + dx
                w_max = w_ref[kh * K + kw]
                w_avg = w_ref[K * K + kh * K + kw]
                tap = (tap
                       + w_max * pm_ref[pl.ds(0, 1), pl.ds(off, S)]
                       + w_avg * pa_ref[pl.ds(0, 1), pl.ds(off, S)])
            if dx != 0:
                tap = tap * hmask_ref[pl.ds(kw, 1), :]
            acc = acc + tap

        att = jax.nn.sigmoid(acc)
        o_ref[...] = att.reshape(o_ref.shape).astype(o_ref.dtype)  # one dense store

    if ncb > 1:
        pl.when(cb == ncb - 1)(_finalize)
    else:
        _finalize()


def spatial_attention(x, weight):
    """x: (N, C, H, W); weight: (1, 2, 7, 7), bias-free. Returns (N, 1, H, W)."""
    N, C, H, W = x.shape
    assert weight.shape == (1, 2, K, K)
    S = H * W
    cblk = _choose_cblk(C, S, x.dtype.itemsize)
    ncb = (C + cblk - 1) // cblk
    SUB = min(8, cblk)
    Lp = _round_up(S + 6 * W + 2 * PAD, 128)     # padded flat-map length

    x_flat = jnp.reshape(x, (N, C, S))           # free view of contiguous NCHW
    w_flat = jnp.reshape(weight, (-1,)).astype(jnp.float32)

    # Horizontal validity mask per kw tap: output column w is valid iff
    # 0 <= w + (kw - PAD) < W (i.e. the tap does not cross a row boundary).
    cols = jnp.arange(S, dtype=jnp.int32) % W
    dxs = jnp.arange(K, dtype=jnp.int32)[:, None] - PAD
    hmask = (((cols[None, :] + dxs) >= 0)
             & ((cols[None, :] + dxs) < W)).astype(jnp.float32)

    kernel = functools.partial(_spatial_attention_kernel,
                               C=C, W=W, cblk=cblk, ncb=ncb)

    scratch = []
    if ncb > 1:
        scratch += [pltpu.VMEM((SUB, S), jnp.float32),     # running channel max
                    pltpu.VMEM((SUB, S), jnp.float32)]     # running channel sum
    scratch += [pltpu.VMEM((1, Lp), jnp.float32),          # padded flat max map
                pltpu.VMEM((1, Lp), jnp.float32)]          # padded flat avg map

    out_flat = pl.pallas_call(
        kernel,
        out_shape=jax.ShapeDtypeStruct((N, 1, S), x.dtype),
        grid_spec=pltpu.PrefetchScalarGridSpec(
            num_scalar_prefetch=0,
            grid=(N, ncb),
            in_specs=[
                pl.BlockSpec(memory_space=pltpu.MemorySpace.SMEM),        # weights
                pl.BlockSpec((K, S), lambda n, cb: (0, 0)),               # hmask
                pl.BlockSpec((1, cblk, S), lambda n, cb: (n, cb, 0)),     # x chunk
            ],
            out_specs=pl.BlockSpec((1, 1, S), lambda n, cb: (n, 0, 0)),
            scratch_shapes=scratch,
        ),
        compiler_params=pltpu.CompilerParams(
            dimension_semantics=("parallel", "arbitrary")),
    )(w_flat, hmask, x_flat)
    return out_flat.reshape(N, 1, H, W)


def spatial_attention_ref(x, weight):
    """Pure-JAX reference matching the PyTorch forward exactly."""
    mx = jnp.max(x, axis=1, keepdims=True)
    av = jnp.mean(x, axis=1, keepdims=True)
    cat = jnp.concatenate([mx, av], axis=1)
    out = lax.conv_general_dilated(
        cat, weight, window_strides=(1, 1),
        padding=((PAD, PAD), (PAD, PAD)),
        dimension_numbers=("NCHW", "OIHW", "NCHW"))
    return jax.nn.sigmoid(out)


if __name__ == "__main__":
    key = jax.random.PRNGKey(0)
    kx, kw = jax.random.split(key)

    N, C, H, W = 2, 4, 16, 16
    x = jax.random.normal(kx, (N, C, H, W), dtype=jnp.float32)
    # Deterministic synthetic init for conv1.weight (shape (1, 2, 7, 7), bias=False).
    weight = jax.random.normal(kw, (1, 2, K, K), dtype=jnp.float32) * 0.1

    out = jax.block_until_ready(spatial_attention(x, weight))
    ref = spatial_attention_ref(x, weight)

    assert out.shape == (N, 1, H, W)
    assert jnp.allclose(out, ref, atol=1e-5, rtol=1e-5)
    print("KERNEL_OK")
</pallas_src>

<mosaic_0001>
module attributes {stable_mosaic.version = 11 : i64} {
  func.func @_spatial_attention_kernel(%arg0: i32, %arg1: i32, %arg2: memref<98xf32, #tpu.memory_space<smem>>, %arg3: memref<7x256xf32, #tpu.memory_space<vmem>>, %arg4: memref<1x4x256xf32, #tpu.memory_space<vmem>>, %arg5: memref<1x1x256xf32, #tpu.memory_space<vmem>>, %arg6: memref<1x384xf32, #tpu.memory_space<vmem>>, %arg7: memref<1x384xf32, #tpu.memory_space<vmem>>) attributes {dimension_semantics = [#tpu.dimension_semantics<parallel>, #tpu.dimension_semantics<arbitrary>], iteration_bounds = array<i64: 2, 1>, scalar_prefetch = 0 : i64, scratch_operands = 2 : i64, tpu.core_type = #tpu.core_type<tc>, window_params = [{transform_indices = @transform_0, window_bounds = array<i64: 98>}, {pipeline_mode = #tpu.pipeline_mode<synchronous>, transform_indices = @transform_1, window_bounds = array<i64: 7, 256>}, {transform_indices = @transform_2, window_bounds = array<i64: 1, 4, 256>}, {transform_indices = @transform_3, window_bounds = array<i64: 1, 1, 256>}]} {
    %cst = arith.constant 0xFF800000 : f32
    %0 = vector.broadcast %cst : f32 to vector<4x256xf32>
    %cst_0 = arith.constant 0.000000e+00 : f32
    %1 = vector.broadcast %cst_0 : f32 to vector<4x256xf32>
    %c0 = arith.constant 0 : index
    %c0_1 = arith.constant 0 : index
    %c0_2 = arith.constant 0 : index
    %2 = vector.load %arg4[%c0, %c0_1, %c0_2] : memref<1x4x256xf32, #tpu.memory_space<vmem>>, vector<1x4x256xf32>
    %3 = vector.shape_cast %2 : vector<1x4x256xf32> to vector<4x256xf32>
    %4 = arith.maximumf %0, %3 : vector<4x256xf32>
    %5 = arith.addf %1, %3 : vector<4x256xf32>
    %cst_3 = arith.constant dense<0xFF800000> : vector<256xf32>
    %6 = vector.multi_reduction <maximumf>, %4, %cst_3 [0] : vector<4x256xf32> to vector<256xf32>
    %7 = vector.shape_cast %6 : vector<256xf32> to vector<1x256xf32>
    %cst_4 = arith.constant dense<0.000000e+00> : vector<256xf32>
    %8 = vector.multi_reduction <add>, %5, %cst_4 [0] : vector<4x256xf32> to vector<256xf32>
    %9 = vector.shape_cast %8 : vector<256xf32> to vector<1x256xf32>
    %cst_5 = arith.constant 2.500000e-01 : f32
    %10 = vector.broadcast %cst_5 : f32 to vector<1x256xf32>
    %11 = arith.mulf %9, %10 : vector<1x256xf32>
    %cst_6 = arith.constant 0.000000e+00 : f32
    %12 = vector.broadcast %cst_6 : f32 to vector<1x384xf32>
    %c0_7 = arith.constant 0 : index
    %c0_8 = arith.constant 0 : index
    %13 = vector.load %arg6[%c0_7, %c0_8] : memref<1x384xf32, #tpu.memory_space<vmem>>, vector<1x384xf32>
    tpu.vector_store %arg6[%c0_7, %c0_8], %12 {strides = array<i32>} : memref<1x384xf32, #tpu.memory_space<vmem>>, vector<1x384xf32>,
    %cst_9 = arith.constant 0.000000e+00 : f32
    %14 = vector.broadcast %cst_9 : f32 to vector<1x384xf32>
    %c0_10 = arith.constant 0 : index
    %c0_11 = arith.constant 0 : index
    %15 = vector.load %arg7[%c0_10, %c0_11] : memref<1x384xf32, #tpu.memory_space<vmem>>, vector<1x384xf32>
    tpu.vector_store %arg7[%c0_10, %c0_11], %14 {strides = array<i32>} : memref<1x384xf32, #tpu.memory_space<vmem>>, vector<1x384xf32>,
    %c0_12 = arith.constant 0 : index
    %c51 = arith.constant 51 : index
    %16 = vector.load %arg6[%c0_12, %c51] : memref<1x384xf32, #tpu.memory_space<vmem>>, vector<1x256xf32>
    tpu.vector_store %arg6[%c0_12, %c51], %7 {strides = array<i32>} : memref<1x384xf32, #tpu.memory_space<vmem>>, vector<1x256xf32>,
    %c0_13 = arith.constant 0 : index
    %c51_14 = arith.constant 51 : index
    %17 = vector.load %arg7[%c0_13, %c51_14] : memref<1x384xf32, #tpu.memory_space<vmem>>, vector<1x256xf32>
    tpu.vector_store %arg7[%c0_13, %c51_14], %11 {strides = array<i32>} : memref<1x384xf32, #tpu.memory_space<vmem>>, vector<1x256xf32>,
    %cst_15 = arith.constant 0.000000e+00 : f32
    %18 = vector.broadcast %cst_15 : f32 to vector<1x256xf32>
    %cst_16 = arith.constant 0.000000e+00 : f32
    %19 = vector.broadcast %cst_16 : f32 to vector<1x256xf32>
    %c0_17 = arith.constant 0 : index
    %20 = memref.load %arg2[%c0_17] : memref<98xf32, #tpu.memory_space<smem>>
    %c49 = arith.constant 49 : index
    %21 = memref.load %arg2[%c49] : memref<98xf32, #tpu.memory_space<smem>>
    %c0_18 = arith.constant 0 : index
    %c0_19 = arith.constant 0 : index
    %22 = vector.load %arg6[%c0_18, %c0_19] : memref<1x384xf32, #tpu.memory_space<vmem>>, vector<1x256xf32>
    %23 = vector.broadcast %20 : f32 to vector<1x256xf32>
    %24 = arith.mulf %23, %22 : vector<1x256xf32>
    %25 = arith.addf %19, %24 : vector<1x256xf32>
    %c0_20 = arith.constant 0 : index
    %c0_21 = arith.constant 0 : index
    %26 = vector.load %arg7[%c0_20, %c0_21] : memref<1x384xf32, #tpu.memory_space<vmem>>, vector<1x256xf32>
    %27 = vector.broadcast %21 : f32 to vector<1x256xf32>
    %28 = arith.mulf %27, %26 : vector<1x256xf32>
    %29 = arith.addf %25, %28 : vector<1x256xf32>
    %c7 = arith.constant 7 : index
    %30 = memref.load %arg2[%c7] : memref<98xf32, #tpu.memory_space<smem>>
    %c56 = arith.constant 56 : index
    %31 = memref.load %arg2[%c56] : memref<98xf32, #tpu.memory_space<smem>>
    %c0_22 = arith.constant 0 : index
    %c16 = arith.constant 16 : index
    %32 = vector.load %arg6[%c0_22, %c16] : memref<1x384xf32, #tpu.memory_space<vmem>>, vector<1x256xf32>
    %33 = vector.broadcast %30 : f32 to vector<1x256xf32>
    %34 = arith.mulf %33, %32 : vector<1x256xf32>
    %35 = arith.addf %29, %34 : vector<1x256xf32>
    %c0_23 = arith.constant 0 : index
    %c16_24 = arith.constant 16 : index
    %36 = vector.load %arg7[%c0_23, %c16_24] : memref<1x384xf32, #tpu.memory_space<vmem>>, vector<1x256xf32>
    %37 = vector.broadcast %31 : f32 to vector<1x256xf32>
    %38 = arith.mulf %37, %36 : vector<1x256xf32>
    %39 = arith.addf %35, %38 : vector<1x256xf32>
    %c14 = arith.constant 14 : index
    %40 = memref.load %arg2[%c14] : memref<98xf32, #tpu.memory_space<smem>>
    %c63 = arith.constant 63 : index
    %41 = memref.load %arg2[%c63] : memref<98xf32, #tpu.memory_space<smem>>
    %c0_25 = arith.constant 0 : index
    %c32 = arith.constant 32 : index
    %42 = vector.load %arg6[%c0_25, %c32] : memref<1x384xf32, #tpu.memory_space<vmem>>, vector<1x256xf32>
    %43 = vector.broadcast %40 : f32 to vector<1x256xf32>
    %44 = arith.mulf %43, %42 : vector<1x256xf32>
    %45 = arith.addf %39, %44 : vector<1x256xf32>
    %c0_26 = arith.constant 0 : index
    %c32_27 = arith.constant 32 : index
    %46 = vector.load %arg7[%c0_26, %c32_27] : memref<1x384xf32, #tpu.memory_space<vmem>>, vector<1x256xf32>
    %47 = vector.broadcast %41 : f32 to vector<1x256xf32>
    %48 = arith.mulf %47, %46 : vector<1x256xf32>
    %49 = arith.addf %45, %48 : vector<1x256xf32>
    %c21 = arith.constant 21 : index
    %50 = memref.load %arg2[%c21] : memref<98xf32, #tpu.memory_space<smem>>
    %c70 = arith.constant 70 : index
    %51 = memref.load %arg2[%c70] : memref<98xf32, #tpu.memory_space<smem>>
    %c0_28 = arith.constant 0 : index
    %c48 = arith.constant 48 : index
    %52 = vector.load %arg6[%c0_28, %c48] : memref<1x384xf32, #tpu.memory_space<vmem>>, vector<1x256xf32>
    %53 = vector.broadcast %50 : f32 to vector<1x256xf32>
    %54 = arith.mulf %53, %52 : vector<1x256xf32>
    %55 = arith.addf %49, %54 : vector<1x256xf32>
    %c0_29 = arith.constant 0 : index
    %c48_30 = arith.constant 48 : index
    %56 = vector.load %arg7[%c0_29, %c48_30] : memref<1x384xf32, #tpu.memory_space<vmem>>, vector<1x256xf32>
    %57 = vector.broadcast %51 : f32 to vector<1x256xf32>
    %58 = arith.mulf %57, %56 : vector<1x256xf32>
    %59 = arith.addf %55, %58 : vector<1x256xf32>
    %c28 = arith.constant 28 : index
    %60 = memref.load %arg2[%c28] : memref<98xf32, #tpu.memory_space<smem>>
    %c77 = arith.constant 77 : index
    %61 = memref.load %arg2[%c77] : memref<98xf32, #tpu.memory_space<smem>>
    %c0_31 = arith.constant 0 : index
    %c64 = arith.constant 64 : index
    %62 = vector.load %arg6[%c0_31, %c64] : memref<1x384xf32, #tpu.memory_space<vmem>>, vector<1x256xf32>
    %63 = vector.broadcast %60 : f32 to vector<1x256xf32>
    %64 = arith.mulf %63, %62 : vector<1x256xf32>
    %65 = arith.addf %59, %64 : vector<1x256xf32>
    %c0_32 = arith.constant 0 : index
    %c64_33 = arith.constant 64 : index
    %66 = vector.load %arg7[%c0_32, %c64_33] : memref<1x384xf32, #tpu.memory_space<vmem>>, vector<1x256xf32>
    %67 = vector.broadcast %61 : f32 to vector<1x256xf32>
    %68 = arith.mulf %67, %66 : vector<1x256xf32>
    %69 = arith.addf %65, %68 : vector<1x256xf32>
    %c35 = arith.constant 35 : index
    %70 = memref.load %arg2[%c35] : memref<98xf32, #tpu.memory_space<smem>>
    %c84 = arith.constant 84 : index
    %71 = memref.load %arg2[%c84] : memref<98xf32, #tpu.memory_space<smem>>
    %c0_34 = arith.constant 0 : index
    %c80 = arith.constant 80 : index
    %72 = vector.load %arg6[%c0_34, %c80] : memref<1x384xf32, #tpu.memory_space<vmem>>, vector<1x256xf32>
    %73 = vector.broadcast %70 : f32 to vector<1x256xf32>
    %74 = arith.mulf %73, %72 : vector<1x256xf32>
    %75 = arith.addf %69, %74 : vector<1x256xf32>
    %c0_35 = arith.constant 0 : index
    %c80_36 = arith.constant 80 : index
    %76 = vector.load %arg7[%c0_35, %c80_36] : memref<1x384xf32, #tpu.memory_space<vmem>>, vector<1x256xf32>
    %77 = vector.broadcast %71 : f32 to vector<1x256xf32>
    %78 = arith.mulf %77, %76 : vector<1x256xf32>
    %79 = arith.addf %75, %78 : vector<1x256xf32>
    %c42 = arith.constant 42 : index
    %80 = memref.load %arg2[%c42] : memref<98xf32, #tpu.memory_space<smem>>
    %c91 = arith.constant 91 : index
    %81 = memref.load %arg2[%c91] : memref<98xf32, #tpu.memory_space<smem>>
    %c0_37 = arith.constant 0 : index
    %c96 = arith.constant 96 : index
    %82 = vector.load %arg6[%c0_37, %c96] : memref<1x384xf32, #tpu.memory_space<vmem>>, vector<1x256xf32>
    %83 = vector.broadcast %80 : f32 to vector<1x256xf32>
    %84 = arith.mulf %83, %82 : vector<1x256xf32>
    %85 = arith.addf %79, %84 : vector<1x256xf32>
    %c0_38 = arith.constant 0 : index
    %c96_39 = arith.constant 96 : index
    %86 = vector.load %arg7[%c0_38, %c96_39] : memref<1x384xf32, #tpu.memory_space<vmem>>, vector<1x256xf32>
    %87 = vector.broadcast %81 : f32 to vector<1x256xf32>
    %88 = arith.mulf %87, %86 : vector<1x256xf32>
    %89 = arith.addf %85, %88 : vector<1x256xf32>
    %c0_40 = arith.constant 0 : index
    %c0_41 = arith.constant 0 : index
    %90 = vector.load %arg3[%c0_40, %c0_41] : memref<7x256xf32, #tpu.memory_space<vmem>>, vector<1x256xf32>
    %91 = arith.mulf %89, %90 : vector<1x256xf32>
    %92 = arith.addf %18, %91 : vector<1x256xf32>
    %cst_42 = arith.constant 0.000000e+00 : f32
    %93 = vector.broadcast %cst_42 : f32 to vector<1x256xf32>
    %c1 = arith.constant 1 : index
    %94 = memref.load %arg2[%c1] : memref<98xf32, #tpu.memory_space<smem>>
    %c50 = arith.constant 50 : index
    %95 = memref.load %arg2[%c50] : memref<98xf32, #tpu.memory_space<smem>>
    %c0_43 = arith.constant 0 : index
    %c1_44 = arith.constant 1 : index
    %96 = vector.load %arg6[%c0_43, %c1_44] : memref<1x384xf32, #tpu.memory_space<vmem>>, vector<1x256xf32>
    %97 = vector.broadcast %94 : f32 to vector<1x256xf32>
    %98 = arith.mulf %97, %96 : vector<1x256xf32>
    %99 = arith.addf %93, %98 : vector<1x256xf32>
    %c0_45 = arith.constant 0 : index
    %c1_46 = arith.constant 1 : index
    %100 = vector.load %arg7[%c0_45, %c1_46] : memref<1x384xf32, #tpu.memory_space<vmem>>, vector<1x256xf32>
    %101 = vector.broadcast %95 : f32 to vector<1x256xf32>
    %102 = arith.mulf %101, %100 : vector<1x256xf32>
    %103 = arith.addf %99, %102 : vector<1x256xf32>
    %c8 = arith.constant 8 : index
    %104 = memref.load %arg2[%c8] : memref<98xf32, #tpu.memory_space<smem>>
    %c57 = arith.constant 57 : index
    %105 = memref.load %arg2[%c57] : memref<98xf32, #tpu.memory_space<smem>>
    %c0_47 = arith.constant 0 : index
    %c17 = arith.constant 17 : index
    %106 = vector.load %arg6[%c0_47, %c17] : memref<1x384xf32, #tpu.memory_space<vmem>>, vector<1x256xf32>
    %107 = vector.broadcast %104 : f32 to vector<1x256xf32>
    %108 = arith.mulf %107, %106 : vector<1x256xf32>
    %109 = arith.addf %103, %108 : vector<1x256xf32>
    %c0_48 = arith.constant 0 : index
    %c17_49 = arith.constant 17 : index
    %110 = vector.load %arg7[%c0_48, %c17_49] : memref<1x384xf32, #tpu.memory_space<vmem>>, vector<1x256xf32>
    %111 = vector.broadcast %105 : f32 to vector<1x256xf32>
    %112 = arith.mulf %111, %110 : vector<1x256xf32>
    %113 = arith.addf %109, %112 : vector<1x256xf32>
    %c15 = arith.constant 15 : index
    %114 = memref.load %arg2[%c15] : memref<98xf32, #tpu.memory_space<smem>>
    %c64_50 = arith.constant 64 : index
    %115 = memref.load %arg2[%c64_50] : memref<98xf32, #tpu.memory_space<smem>>
    %c0_51 = arith.constant 0 : index
    %c33 = arith.constant 33 : index
    %116 = vector.load %arg6[%c0_51, %c33] : memref<1x384xf32, #tpu.memory_space<vmem>>, vector<1x256xf32>
    %117 = vector.broadcast %114 : f32 to vector<1x256xf32>
    %118 = arith.mulf %117, %116 : vector<1x256xf32>
    %119 = arith.addf %113, %118 : vector<1x256xf32>
    %c0_52 = arith.constant 0 : index
    %c33_53 = arith.constant 33 : index
    %120 = vector.load %arg7[%c0_52, %c33_53] : memref<1x384xf32, #tpu.memory_space<vmem>>, vector<1x256xf32>
    %121 = vector.broadcast %115 : f32 to vector<1x256xf32>
    %122 = arith.mulf %121, %120 : vector<1x256xf32>
    %123 = arith.addf %119, %122 : vector<1x256xf32>
    %c22 = arith.constant 22 : index
    %124 = memref.load %arg2[%c22] : memref<98xf32, #tpu.memory_space<smem>>
    %c71 = arith.constant 71 : index
    %125 = memref.load %arg2[%c71] : memref<98xf32, #tpu.memory_space<smem>>
    %c0_54 = arith.constant 0 : index
    %c49_55 = arith.constant 49 : index
    %126 = vector.load %arg6[%c0_54, %c49_55] : memref<1x384xf32, #tpu.memory_space<vmem>>, vector<1x256xf32>
    %127 = vector.broadcast %124 : f32 to vector<1x256xf32>
    %128 = arith.mulf %127, %126 : vector<1x256xf32>
    %129 = arith.addf %123, %128 : vector<1x256xf32>
    %c0_56 = arith.constant 0 : index
    %c49_57 = arith.constant 49 : index
    %130 = vector.load %arg7[%c0_56, %c49_57] : memref<1x384xf32, #tpu.memory_space<vmem>>, vector<1x256xf32>
    %131 = vector.broadcast %125 : f32 to vector<1x256xf32>
    %132 = arith.mulf %131, %130 : vector<1x256xf32>
    %133 = arith.addf %129, %132 : vector<1x256xf32>
    %c29 = arith.constant 29 : index
    %134 = memref.load %arg2[%c29] : memref<98xf32, #tpu.memory_space<smem>>
    %c78 = arith.constant 78 : index
    %135 = memref.load %arg2[%c78] : memref<98xf32, #tpu.memory_space<smem>>
    %c0_58 = arith.constant 0 : index
    %c65 = arith.constant 65 : index
    %136 = vector.load %arg6[%c0_58, %c65] : memref<1x384xf32, #tpu.memory_space<vmem>>, vector<1x256xf32>
    %137 = vector.broadcast %134 : f32 to vector<1x256xf32>
    %138 = arith.mulf %137, %136 : vector<1x256xf32>
    %139 = arith.addf %133, %138 : vector<1x256xf32>
    %c0_59 = arith.constant 0 : index
    %c65_60 = arith.constant 65 : index
    %140 = vector.load %arg7[%c0_59, %c65_60] : memref<1x384xf32, #tpu.memory_space<vmem>>, vector<1x256xf32>
    %141 = vector.broadcast %135 : f32 to vector<1x256xf32>
    %142 = arith.mulf %141, %140 : vector<1x256xf32>
    %143 = arith.addf %139, %142 : vector<1x256xf32>
    %c36 = arith.constant 36 : index
    %144 = memref.load %arg2[%c36] : memref<98xf32, #tpu.memory_space<smem>>
    %c85 = arith.constant 85 : index
    %145 = memref.load %arg2[%c85] : memref<98xf32, #tpu.memory_space<smem>>
    %c0_61 = arith.constant 0 : index
    %c81 = arith.constant 81 : index
    %146 = vector.load %arg6[%c0_61, %c81] : memref<1x384xf32, #tpu.memory_space<vmem>>, vector<1x256xf32>
    %147 = vector.broadcast %144 : f32 to vector<1x256xf32>
    %148 = arith.mulf %147, %146 : vector<1x256xf32>
    %149 = arith.addf %143, %148 : vector<1x256xf32>
    %c0_62 = arith.constant 0 : index
    %c81_63 = arith.constant 81 : index
    %150 = vector.load %arg7[%c0_62, %c81_63] : memref<1x384xf32, #tpu.memory_space<vmem>>, vector<1x256xf32>
    %151 = vector.broadcast %145 : f32 to vector<1x256xf32>
    %152 = arith.mulf %151, %150 : vector<1x256xf32>
    %153 = arith.addf %149, %152 : vector<1x256xf32>
    %c43 = arith.constant 43 : index
    %154 = memref.load %arg2[%c43] : memref<98xf32, #tpu.memory_space<smem>>
    %c92 = arith.constant 92 : index
    %155 = memref.load %arg2[%c92] : memref<98xf32, #tpu.memory_space<smem>>
    %c0_64 = arith.constant 0 : index
    %c97 = arith.constant 97 : index
    %156 = vector.load %arg6[%c0_64, %c97] : memref<1x384xf32, #tpu.memory_space<vmem>>, vector<1x256xf32>
    %157 = vector.broadcast %154 : f32 to vector<1x256xf32>
    %158 = arith.mulf %157, %156 : vector<1x256xf32>
    %159 = arith.addf %153, %158 : vector<1x256xf32>
    %c0_65 = arith.constant 0 : index
    %c97_66 = arith.constant 97 : index
    %160 = vector.load %arg7[%c0_65, %c97_66] : memref<1x384xf32, #tpu.memory_space<vmem>>, vector<1x256xf32>
    %161 = vector.broadcast %155 : f32 to vector<1x256xf32>
    %162 = arith.mulf %161, %160 : vector<1x256xf32>
    %163 = arith.addf %159, %162 : vector<1x256xf32>
    %c1_67 = arith.constant 1 : index
    %c0_68 = arith.constant 0 : index
    %164 = vector.load %arg3[%c1_67, %c0_68] : memref<7x256xf32, #tpu.memory_space<vmem>>, vector<1x256xf32>
    %165 = arith.mulf %163, %164 : vector<1x256xf32>
    %166 = arith.addf %92, %165 : vector<1x256xf32>
    %cst_69 = arith.constant 0.000000e+00 : f32
    %167 = vector.broadcast %cst_69 : f32 to vector<1x256xf32>
    %c2 = arith.constant 2 : index
    %168 = memref.load %arg2[%c2] : memref<98xf32, #tpu.memory_space<smem>>
    %c51_70 = arith.constant 51 : index
    %169 = memref.load %arg2[%c51_70] : memref<98xf32, #tpu.memory_space<smem>>
    %c0_71 = arith.constant 0 : index
    %c2_72 = arith.constant 2 : index
    %170 = vector.load %arg6[%c0_71, %c2_72] : memref<1x384xf32, #tpu.memory_space<vmem>>, vector<1x256xf32>
    %171 = vector.broadcast %168 : f32 to vector<1x256xf32>
    %172 = arith.mulf %171, %170 : vector<1x256xf32>
    %173 = arith.addf %167, %172 : vector<1x256xf32>
    %c0_73 = arith.constant 0 : index
    %c2_74 = arith.constant 2 : index
    %174 = vector.load %arg7[%c0_73, %c2_74] : memref<1x384xf32, #tpu.memory_space<vmem>>, vector<1x256xf32>
    %175 = vector.broadcast %169 : f32 to vector<1x256xf32>
    %176 = arith.mulf %175, %174 : vector<1x256xf32>
    %177 = arith.addf %173, %176 : vector<1x256xf32>
    %c9 = arith.constant 9 : index
    %178 = memref.load %arg2[%c9] : memref<98xf32, #tpu.memory_space<smem>>
    %c58 = arith.constant 58 : index
    %179 = memref.load %arg2[%c58] : memref<98xf32, #tpu.memory_space<smem>>
    %c0_75 = arith.constant 0 : index
    %c18 = arith.constant 18 : index
    %180 = vector.load %arg6[%c0_75, %c18] : memref<1x384xf32, #tpu.memory_space<vmem>>, vector<1x256xf32>
    %181 = vector.broadcast %178 : f32 to vector<1x256xf32>
    %182 = arith.mulf %181, %180 : vector<1x256xf32>
    %183 = arith.addf %177, %182 : vector<1x256xf32>
    %c0_76 = arith.constant 0 : index
    %c18_77 = arith.constant 18 : index
    %184 = vector.load %arg7[%c0_76, %c18_77] : memref<1x384xf32, #tpu.memory_space<vmem>>, vector<1x256xf32>
    %185 = vector.broadcast %179 : f32 to vector<1x256xf32>
    %186 = arith.mulf %185, %184 : vector<1x256xf32>
    %187 = arith.addf %183, %186 : vector<1x256xf32>
    %c16_78 = arith.constant 16 : index
    %188 = memref.load %arg2[%c16_78] : memref<98xf32, #tpu.memory_space<smem>>
    %c65_79 = arith.constant 65 : index
    %189 = memref.load %arg2[%c65_79] : memref<98xf32, #tpu.memory_space<smem>>
    %c0_80 = arith.constant 0 : index
    %c34 = arith.constant 34 : index
    %190 = vector.load %arg6[%c0_80, %c34] : memref<1x384xf32, #tpu.memory_space<vmem>>, vector<1x256xf32>
    %191 = vector.broadcast %188 : f32 to vector<1x256xf32>
    %192 = arith.mulf %191, %190 : vector<1x256xf32>
    %193 = arith.addf %187, %192 : vector<1x256xf32>
    %c0_81 = arith.constant 0 : index
    %c34_82 = arith.constant 34 : index
    %194 = vector.load %arg7[%c0_81, %c34_82] : memref<1x384xf32, #tpu.memory_space<vmem>>, vector<1x256xf32>
    %195 = vector.broadcast %189 : f32 to vector<1x256xf32>
    %196 = arith.mulf %195, %194 : vector<1x256xf32>
    %197 = arith.addf %193, %196 : vector<1x256xf32>
    %c23 = arith.constant 23 : index
    %198 = memref.load %arg2[%c23] : memref<98xf32, #tpu.memory_space<smem>>
    %c72 = arith.constant 72 : index
    %199 = memref.load %arg2[%c72] : memref<98xf32, #tpu.memory_space<smem>>
    %c0_83 = arith.constant 0 : index
    %c50_84 = arith.constant 50 : index
    %200 = vector.load %arg6[%c0_83, %c50_84] : memref<1x384xf32, #tpu.memory_space<vmem>>, vector<1x256xf32>
    %201 = vector.broadcast %198 : f32 to vector<1x256xf32>
    %202 = arith.mulf %201, %200 : vector<1x256xf32>
    %203 = arith.addf %197, %202 : vector<1x256xf32>
    %c0_85 = arith.constant 0 : index
    %c50_86 = arith.constant 50 : index
    %204 = vector.load %arg7[%c0_85, %c50_86] : memref<1x384xf32, #tpu.memory_space<vmem>>, vector<1x256xf32>
    %205 = vector.broadcast %199 : f32 to vector<1x256xf32>
    %206 = arith.mulf %205, %204 : vector<1x256xf32>
    %207 = arith.addf %203, %206 : vector<1x256xf32>
    %c30 = arith.constant 30 : index
    %208 = memref.load %arg2[%c30] : memref<98xf32, #tpu.memory_space<smem>>
    %c79 = arith.constant 79 : index
    %209 = memref.load %arg2[%c79] : memref<98xf32, #tpu.memory_space<smem>>
    %c0_87 = arith.constant 0 : index
    %c66 = arith.constant 66 : index
    %210 = vector.load %arg6[%c0_87, %c66] : memref<1x384xf32, #tpu.memory_space<vmem>>, vector<1x256xf32>
    %211 = vector.broadcast %208 : f32 to vector<1x256xf32>
    %212 = arith.mulf %211, %210 : vector<1x256xf32>
    %213 = arith.addf %207, %212 : vector<1x256xf32>
    %c0_88 = arith.constant 0 : index
    %c66_89 = arith.constant 66 : index
    %214 = vector.load %arg7[%c0_88, %c66_89] : memref<1x384xf32, #tpu.memory_space<vmem>>, vector<1x256xf32>
    %215 = vector.broadcast %209 : f32 to vector<1x256xf32>
    %216 = arith.mulf %215, %214 : vector<1x256xf32>
    %217 = arith.addf %213, %216 : vector<1x256xf32>
    %c37 = arith.constant 37 : index
    %218 = memref.load %arg2[%c37] : memref<98xf32, #tpu.memory_space<smem>>
    %c86 = arith.constant 86 : index
    %219 = memref.load %arg2[%c86] : memref<98xf32, #tpu.memory_space<smem>>
    %c0_90 = arith.constant 0 : index
    %c82 = arith.constant 82 : index
    %220 = vector.load %arg6[%c0_90, %c82] : memref<1x384xf32, #tpu.memory_space<vmem>>, vector<1x256xf32>
    %221 = vector.broadcast %218 : f32 to vector<1x256xf32>
    %222 = arith.mulf %221, %220 : vector<1x256xf32>
    %223 = arith.addf %217, %222 : vector<1x256xf32>
    %c0_91 = arith.constant 0 : index
    %c82_92 = arith.constant 82 : index
    %224 = vector.load %arg7[%c0_91, %c82_92] : memref<1x384xf32, #tpu.memory_space<vmem>>, vector<1x256xf32>
    %225 = vector.broadcast %219 : f32 to vector<1x256xf32>
    %226 = arith.mulf %225, %224 : vector<1x256xf32>
    %227 = arith.addf %223, %226 : vector<1x256xf32>
    %c44 = arith.constant 44 : index
    %228 = memref.load %arg2[%c44] : memref<98xf32, #tpu.memory_space<smem>>
    %c93 = arith.constant 93 : index
    %229 = memref.load %arg2[%c93] : memref<98xf32, #tpu.memory_space<smem>>
    %c0_93 = arith.constant 0 : index
    %c98 = arith.constant 98 : index
    %230 = vector.load %arg6[%c0_93, %c98] : memref<1x384xf32, #tpu.memory_space<vmem>>, vector<1x256xf32>
    %231 = vector.broadcast %228 : f32 to vector<1x256xf32>
    %232 = arith.mulf %231, %230 : vector<1x256xf32>
    %233 = arith.addf %227, %232 : vector<1x256xf32>
    %c0_94 = arith.constant 0 : index
    %c98_95 = arith.constant 98 : index
    %234 = vector.load %arg7[%c0_94, %c98_95] : memref<1x384xf32, #tpu.memory_space<vmem>>, vector<1x256xf32>
    %235 = vector.broadcast %229 : f32 to vector<1x256xf32>
    %236 = arith.mulf %235, %234 : vector<1x256xf32>
    %237 = arith.addf %233, %236 : vector<1x256xf32>
    %c2_96 = arith.constant 2 : index
    %c0_97 = arith.constant 0 : index
    %238 = vector.load %arg3[%c2_96, %c0_97] : memref<7x256xf32, #tpu.memory_space<vmem>>, vector<1x256xf32>
    %239 = arith.mulf %237, %238 : vector<1x256xf32>
    %240 = arith.addf %166, %239 : vector<1x256xf32>
    %cst_98 = arith.constant 0.000000e+00 : f32
    %241 = vector.broadcast %cst_98 : f32 to vector<1x256xf32>
    %c3 = arith.constant 3 : index
    %242 = memref.load %arg2[%c3] : memref<98xf32, #tpu.memory_space<smem>>
    %c52 = arith.constant 52 : index
    %243 = memref.load %arg2[%c52] : memref<98xf32, #tpu.memory_space<smem>>
    %c0_99 = arith.constant 0 : index
    %c3_100 = arith.constant 3 : index
    %244 = vector.load %arg6[%c0_99, %c3_100] : memref<1x384xf32, #tpu.memory_space<vmem>>, vector<1x256xf32>
    %245 = vector.broadcast %242 : f32 to vector<1x256xf32>
    %246 = arith.mulf %245, %244 : vector<1x256xf32>
    %247 = arith.addf %241, %246 : vector<1x256xf32>
    %c0_101 = arith.constant 0 : index
    %c3_102 = arith.constant 3 : index
    %248 = vector.load %arg7[%c0_101, %c3_102] : memref<1x384xf32, #tpu.memory_space<vmem>>, vector<1x256xf32>
    %249 = vector.broadcast %243 : f32 to vector<1x256xf32>
    %250 = arith.mulf %249, %248 : vector<1x256xf32>
    %251 = arith.addf %247, %250 : vector<1x256xf32>
    %c10 = arith.constant 10 : index
    %252 = memref.load %arg2[%c10] : memref<98xf32, #tpu.memory_space<smem>>
    %c59 = arith.constant 59 : index
    %253 = memref.load %arg2[%c59] : memref<98xf32, #tpu.memory_space<smem>>
    %c0_103 = arith.constant 0 : index
    %c19 = arith.constant 19 : index
    %254 = vector.load %arg6[%c0_103, %c19] : memref<1x384xf32, #tpu.memory_space<vmem>>, vector<1x256xf32>
    %255 = vector.broadcast %252 : f32 to vector<1x256xf32>
    %256 = arith.mulf %255, %254 : vector<1x256xf32>
    %257 = arith.addf %251, %256 : vector<1x256xf32>
    %c0_104 = arith.constant 0 : index
    %c19_105 = arith.constant 19 : index
    %258 = vector.load %arg7[%c0_104, %c19_105] : memref<1x384xf32, #tpu.memory_space<vmem>>, vector<1x256xf32>
    %259 = vector.broadcast %253 : f32 to vector<1x256xf32>
    %260 = arith.mulf %259, %258 : vector<1x256xf32>
    %261 = arith.addf %257, %260 : vector<1x256xf32>
    %c17_106 = arith.constant 17 : index
    %262 = memref.load %arg2[%c17_106] : memref<98xf32, #tpu.memory_space<smem>>
    %c66_107 = arith.constant 66 : index
    %263 = memref.load %arg2[%c66_107] : memref<98xf32, #tpu.memory_space<smem>>
    %c0_108 = arith.constant 0 : index
    %c35_109 = arith.constant 35 : index
    %264 = vector.load %arg6[%c0_108, %c35_109] : memref<1x384xf32, #tpu.memory_space<vmem>>, vector<1x256xf32>
    %265 = vector.broadcast %262 : f32 to vector<1x256xf32>
    %266 = arith.mulf %265, %264 : vector<1x256xf32>
    %267 = arith.addf %261, %266 : vector<1x256xf32>
    %c0_110 = arith.constant 0 : index
    %c35_111 = arith.constant 35 : index
    %268 = vector.load %arg7[%c0_110, %c35_111] : memref<1x384xf32, #tpu.memory_space<vmem>>, vector<1x256xf32>
    %269 = vector.broadcast %263 : f32 to vector<1x256xf32>
    %270 = arith.mulf %269, %268 : vector<1x256xf32>
    %271 = arith.addf %267, %270 : vector<1x256xf32>
    %c24 = arith.constant 24 : index
    %272 = memref.load %arg2[%c24] : memref<98xf32, #tpu.memory_space<smem>>
    %c73 = arith.constant 73 : index
    %273 = memref.load %arg2[%c73] : memref<98xf32, #tpu.memory_space<smem>>
    %c0_112 = arith.constant 0 : index
    %c51_113 = arith.constant 51 : index
    %274 = vector.load %arg6[%c0_112, %c51_113] : memref<1x384xf32, #tpu.memory_space<vmem>>, vector<1x256xf32>
    %275 = vector.broadcast %272 : f32 to vector<1x256xf32>
    %276 = arith.mulf %275, %274 : vector<1x256xf32>
    %277 = arith.addf %271, %276 : vector<1x256xf32>
    %c0_114 = arith.constant 0 : index
    %c51_115 = arith.constant 51 : index
    %278 = vector.load %arg7[%c0_114, %c51_115] : memref<1x384xf32, #tpu.memory_space<vmem>>, vector<1x256xf32>
    %279 = vector.broadcast %273 : f32 to vector<1x256xf32>
    %280 = arith.mulf %279, %278 : vector<1x256xf32>
    %281 = arith.addf %277, %280 : vector<1x256xf32>
    %c31 = arith.constant 31 : index
    %282 = memref.load %arg2[%c31] : memref<98xf32, #tpu.memory_space<smem>>
    %c80_116 = arith.constant 80 : index
    %283 = memref.load %arg2[%c80_116] : memref<98xf32, #tpu.memory_space<smem>>
    %c0_117 = arith.constant 0 : index
    %c67 = arith.constant 67 : index
    %284 = vector.load %arg6[%c0_117, %c67] : memref<1x384xf32, #tpu.memory_space<vmem>>, vector<1x256xf32>
    %285 = vector.broadcast %282 : f32 to vector<1x256xf32>
    %286 = arith.mulf %285, %284 : vector<1x256xf32>
    %287 = arith.addf %281, %286 : vector<1x256xf32>
    %c0_118 = arith.constant 0 : index
    %c67_119 = arith.constant 67 : index
    %288 = vector.load %arg7[%c0_118, %c67_119] : memref<1x384xf32, #tpu.memory_space<vmem>>, vector<1x256xf32>
    %289 = vector.broadcast %283 : f32 to vector<1x256xf32>
    %290 = arith.mulf %289, %288 : vector<1x256xf32>
    %291 = arith.addf %287, %290 : vector<1x256xf32>
    %c38 = arith.constant 38 : index
    %292 = memref.load %arg2[%c38] : memref<98xf32, #tpu.memory_space<smem>>
    %c87 = arith.constant 87 : index
    %293 = memref.load %arg2[%c87] : memref<98xf32, #tpu.memory_space<smem>>
    %c0_120 = arith.constant 0 : index
    %c83 = arith.constant 83 : index
    %294 = vector.load %arg6[%c0_120, %c83] : memref<1x384xf32, #tpu.memory_space<vmem>>, vector<1x256xf32>
    %295 = vector.broadcast %292 : f32 to vector<1x256xf32>
    %296 = arith.mulf %295, %294 : vector<1x256xf32>
    %297 = arith.addf %291, %296 : vector<1x256xf32>
    %c0_121 = arith.constant 0 : index
    %c83_122 = arith.constant 83 : index
    %298 = vector.load %arg7[%c0_121, %c83_122] : memref<1x384xf32, #tpu.memory_space<vmem>>, vector<1x256xf32>
    %299 = vector.broadcast %293 : f32 to vector<1x256xf32>
    %300 = arith.mulf %299, %298 : vector<1x256xf32>
    %301 = arith.addf %297, %300 : vector<1x256xf32>
    %c45 = arith.constant 45 : index
    %302 = memref.load %arg2[%c45] : memref<98xf32, #tpu.memory_space<smem>>
    %c94 = arith.constant 94 : index
    %303 = memref.load %arg2[%c94] : memref<98xf32, #tpu.memory_space<smem>>
    %c0_123 = arith.constant 0 : index
    %c99 = arith.constant 99 : index
    %304 = vector.load %arg6[%c0_123, %c99] : memref<1x384xf32, #tpu.memory_space<vmem>>, vector<1x256xf32>
    %305 = vector.broadcast %302 : f32 to vector<1x256xf32>
    %306 = arith.mulf %305, %304 : vector<1x256xf32>
    %307 = arith.addf %301, %306 : vector<1x256xf32>
    %c0_124 = arith.constant 0 : index
    %c99_125 = arith.constant 99 : index
    %308 = vector.load %arg7[%c0_124, %c99_125] : memref<1x384xf32, #tpu.memory_space<vmem>>, vector<1x256xf32>
    %309 = vector.broadcast %303 : f32 to vector<1x256xf32>
    %310 = arith.mulf %309, %308 : vector<1x256xf32>
    %311 = arith.addf %307, %310 : vector<1x256xf32>
    %312 = arith.addf %240, %311 : vector<1x256xf32>
    %cst_126 = arith.constant 0.000000e+00 : f32
    %313 = vector.broadcast %cst_126 : f32 to vector<1x256xf32>
    %c4 = arith.constant 4 : index
    %314 = memref.load %arg2[%c4] : memref<98xf32, #tpu.memory_space<smem>>
    %c53 = arith.constant 53 : index
    %315 = memref.load %arg2[%c53] : memref<98xf32, #tpu.memory_space<smem>>
    %c0_127 = arith.constant 0 : index
    %c4_128 = arith.constant 4 : index
    %316 = vector.load %arg6[%c0_127, %c4_128] : memref<1x384xf32, #tpu.memory_space<vmem>>, vector<1x256xf32>
    %317 = vector.broadcast %314 : f32 to vector<1x256xf32>
    %318 = arith.mulf %317, %316 : vector<1x256xf32>
    %319 = arith.addf %313, %318 : vector<1x256xf32>
    %c0_129 = arith.constant 0 : index
    %c4_130 = arith.constant 4 : index
    %320 = vector.load %arg7[%c0_129, %c4_130] : memref<1x384xf32, #tpu.memory_space<vmem>>, vector<1x256xf32>
    %321 = vector.broadcast %315 : f32 to vector<1x256xf32>
    %322 = arith.mulf %321, %320 : vector<1x256xf32>
    %323 = arith.addf %319, %322 : vector<1x256xf32>
    %c11 = arith.constant 11 : index
    %324 = memref.load %arg2[%c11] : memref<98xf32, #tpu.memory_space<smem>>
    %c60 = arith.constant 60 : index
    %325 = memref.load %arg2[%c60] : memref<98xf32, #tpu.memory_space<smem>>
    %c0_131 = arith.constant 0 : index
    %c20 = arith.constant 20 : index
    %326 = vector.load %arg6[%c0_131, %c20] : memref<1x384xf32, #tpu.memory_space<vmem>>, vector<1x256xf32>
    %327 = vector.broadcast %324 : f32 to vector<1x256xf32>
    %328 = arith.mulf %327, %326 : vector<1x256xf32>
    %329 = arith.addf %323, %328 : vector<1x256xf32>
    %c0_132 = arith.constant 0 : index
    %c20_133 = arith.constant 20 : index
    %330 = vector.load %arg7[%c0_132, %c20_133] : memref<1x384xf32, #tpu.memory_space<vmem>>, vector<1x256xf32>
    %331 = vector.broadcast %325 : f32 to vector<1x256xf32>
    %332 = arith.mulf %331, %330 : vector<1x256xf32>
    %333 = arith.addf %329, %332 : vector<1x256xf32>
    %c18_134 = arith.constant 18 : index
    %334 = memref.load %arg2[%c18_134] : memref<98xf32, #tpu.memory_space<smem>>
    %c67_135 = arith.constant 67 : index
    %335 = memref.load %arg2[%c67_135] : memref<98xf32, #tpu.memory_space<smem>>
    %c0_136 = arith.constant 0 : index
    %c36_137 = arith.constant 36 : index
    %336 = vector.load %arg6[%c0_136, %c36_137] : memref<1x384xf32, #tpu.memory_space<vmem>>, vector<1x256xf32>
    %337 = vector.broadcast %334 : f32 to vector<1x256xf32>
    %338 = arith.mulf %337, %336 : vector<1x256xf32>
    %339 = arith.addf %333, %338 : vector<1x256xf32>
    %c0_138 = arith.constant 0 : index
    %c36_139 = arith.constant 36 : index
    %340 = vector.load %arg7[%c0_138, %c36_139] : memref<1x384xf32, #tpu.memory_space<vmem>>, vector<1x256xf32>
    %341 = vector.broadcast %335 : f32 to vector<1x256xf32>
    %342 = arith.mulf %341, %340 : vector<1x256xf32>
    %343 = arith.addf %339, %342 : vector<1x256xf32>
    %c25 = arith.constant 25 : index
    %344 = memref.load %arg2[%c25] : memref<98xf32, #tpu.memory_space<smem>>
    %c74 = arith.constant 74 : index
    %345 = memref.load %arg2[%c74] : memref<98xf32, #tpu.memory_space<smem>>
    %c0_140 = arith.constant 0 : index
    %c52_141 = arith.constant 52 : index
    %346 = vector.load %arg6[%c0_140, %c52_141] : memref<1x384xf32, #tpu.memory_space<vmem>>, vector<1x256xf32>
    %347 = vector.broadcast %344 : f32 to vector<1x256xf32>
    %348 = arith.mulf %347, %346 : vector<1x256xf32>
    %349 = arith.addf %343, %348 : vector<1x256xf32>
    %c0_142 = arith.constant 0 : index
    %c52_143 = arith.constant 52 : index
    %350 = vector.load %arg7[%c0_142, %c52_143] : memref<1x384xf32, #tpu.memory_space<vmem>>, vector<1x256xf32>
    %351 = vector.broadcast %345 : f32 to vector<1x256xf32>
    %352 = arith.mulf %351, %350 : vector<1x256xf32>
    %353 = arith.addf %349, %352 : vector<1x256xf32>
    %c32_144 = arith.constant 32 : index
    %354 = memref.load %arg2[%c32_144] : memref<98xf32, #tpu.memory_space<smem>>
    %c81_145 = arith.constant 81 : index
    %355 = memref.load %arg2[%c81_145] : memref<98xf32, #tpu.memory_space<smem>>
    %c0_146 = arith.constant 0 : index
    %c68 = arith.constant 68 : index
    %356 = vector.load %arg6[%c0_146, %c68] : memref<1x384xf32, #tpu.memory_space<vmem>>, vector<1x256xf32>
    %357 = vector.broadcast %354 : f32 to vector<1x256xf32>
    %358 = arith.mulf %357, %356 : vector<1x256xf32>
    %359 = arith.addf %353, %358 : vector<1x256xf32>
    %c0_147 = arith.constant 0 : index
    %c68_148 = arith.constant 68 : index
    %360 = vector.load %arg7[%c0_147, %c68_148] : memref<1x384xf32, #tpu.memory_space<vmem>>, vector<1x256xf32>
    %361 = vector.broadcast %355 : f32 to vector<1x256xf32>
    %362 = arith.mulf %361, %360 : vector<1x256xf32>
    %363 = arith.addf %359, %362 : vector<1x256xf32>
    %c39 = arith.constant 39 : index
    %364 = memref.load %arg2[%c39] : memref<98xf32, #tpu.memory_space<smem>>
    %c88 = arith.constant 88 : index
    %365 = memref.load %arg2[%c88] : memref<98xf32, #tpu.memory_space<smem>>
    %c0_149 = arith.constant 0 : index
    %c84_150 = arith.constant 84 : index
    %366 = vector.load %arg6[%c0_149, %c84_150] : memref<1x384xf32, #tpu.memory_space<vmem>>, vector<1x256xf32>
    %367 = vector.broadcast %364 : f32 to vector<1x256xf32>
    %368 = arith.mulf %367, %366 : vector<1x256xf32>
    %369 = arith.addf %363, %368 : vector<1x256xf32>
    %c0_151 = arith.constant 0 : index
    %c84_152 = arith.constant 84 : index
    %370 = vector.load %arg7[%c0_151, %c84_152] : memref<1x384xf32, #tpu.memory_space<vmem>>, vector<1x256xf32>
    %371 = vector.broadcast %365 : f32 to vector<1x256xf32>
    %372 = arith.mulf %371, %370 : vector<1x256xf32>
    %373 = arith.addf %369, %372 : vector<1x256xf32>
    %c46 = arith.constant 46 : index
    %374 = memref.load %arg2[%c46] : memref<98xf32, #tpu.memory_space<smem>>
    %c95 = arith.constant 95 : index
    %375 = memref.load %arg2[%c95] : memref<98xf32, #tpu.memory_space<smem>>
    %c0_153 = arith.constant 0 : index
    %c100 = arith.constant 100 : index
    %376 = vector.load %arg6[%c0_153, %c100] : memref<1x384xf32, #tpu.memory_space<vmem>>, vector<1x256xf32>
    %377 = vector.broadcast %374 : f32 to vector<1x256xf32>
    %378 = arith.mulf %377, %376 : vector<1x256xf32>
    %379 = arith.addf %373, %378 : vector<1x256xf32>
    %c0_154 = arith.constant 0 : index
    %c100_155 = arith.constant 100 : index
    %380 = vector.load %arg7[%c0_154, %c100_155] : memref<1x384xf32, #tpu.memory_space<vmem>>, vector<1x256xf32>
    %381 = vector.broadcast %375 : f32 to vector<1x256xf32>
    %382 = arith.mulf %381, %380 : vector<1x256xf32>
    %383 = arith.addf %379, %382 : vector<1x256xf32>
    %c4_156 = arith.constant 4 : index
    %c0_157 = arith.constant 0 : index
    %384 = vector.load %arg3[%c4_156, %c0_157] : memref<7x256xf32, #tpu.memory_space<vmem>>, vector<1x256xf32>
    %385 = arith.mulf %383, %384 : vector<1x256xf32>
    %386 = arith.addf %312, %385 : vector<1x256xf32>
    %cst_158 = arith.constant 0.000000e+00 : f32
    %387 = vector.broadcast %cst_158 : f32 to vector<1x256xf32>
    %c5 = arith.constant 5 : index
    %388 = memref.load %arg2[%c5] : memref<98xf32, #tpu.memory_space<smem>>
    %c54 = arith.constant 54 : index
    %389 = memref.load %arg2[%c54] : memref<98xf32, #tpu.memory_space<smem>>
    %c0_159 = arith.constant 0 : index
    %c5_160 = arith.constant 5 : index
    %390 = vector.load %arg6[%c0_159, %c5_160] : memref<1x384xf32, #tpu.memory_space<vmem>>, vector<1x256xf32>
    %391 = vector.broadcast %388 : f32 to vector<1x256xf32>
    %392 = arith.mulf %391, %390 : vector<1x256xf32>
    %393 = arith.addf %387, %392 : vector<1x256xf32>
    %c0_161 = arith.constant 0 : index
    %c5_162 = arith.constant 5 : index
    %394 = vector.load %arg7[%c0_161, %c5_162] : memref<1x384xf32, #tpu.memory_space<vmem>>, vector<1x256xf32>
    %395 = vector.broadcast %389 : f32 to vector<1x256xf32>
    %396 = arith.mulf %395, %394 : vector<1x256xf32>
    %397 = arith.addf %393, %396 : vector<1x256xf32>
    %c12 = arith.constant 12 : index
    %398 = memref.load %arg2[%c12] : memref<98xf32, #tpu.memory_space<smem>>
    %c61 = arith.constant 61 : index
    %399 = memref.load %arg2[%c61] : memref<98xf32, #tpu.memory_space<smem>>
    %c0_163 = arith.constant 0 : index
    %c21_164 = arith.constant 21 : index
    %400 = vector.load %arg6[%c0_163, %c21_164] : memref<1x384xf32, #tpu.memory_space<vmem>>, vector<1x256xf32>
    %401 = vector.broadcast %398 : f32 to vector<1x256xf32>
    %402 = arith.mulf %401, %400 : vector<1x256xf32>
    %403 = arith.addf %397, %402 : vector<1x256xf32>
    %c0_165 = arith.constant 0 : index
    %c21_166 = arith.constant 21 : index
    %404 = vector.load %arg7[%c0_165, %c21_166] : memref<1x384xf32, #tpu.memory_space<vmem>>, vector<1x256xf32>
    %405 = vector.broadcast %399 : f32 to vector<1x256xf32>
    %406 = arith.mulf %405, %404 : vector<1x256xf32>
    %407 = arith.addf %403, %406 : vector<1x256xf32>
    %c19_167 = arith.constant 19 : index
    %408 = memref.load %arg2[%c19_167] : memref<98xf32, #tpu.memory_space<smem>>
    %c68_168 = arith.constant 68 : index
    %409 = memref.load %arg2[%c68_168] : memref<98xf32, #tpu.memory_space<smem>>
    %c0_169 = arith.constant 0 : index
    %c37_170 = arith.constant 37 : index
    %410 = vector.load %arg6[%c0_169, %c37_170] : memref<1x384xf32, #tpu.memory_space<vmem>>, vector<1x256xf32>
    %411 = vector.broadcast %408 : f32 to vector<1x256xf32>
    %412 = arith.mulf %411, %410 : vector<1x256xf32>
    %413 = arith.addf %407, %412 : vector<1x256xf32>
    %c0_171 = arith.constant 0 : index
    %c37_172 = arith.constant 37 : index
    %414 = vector.load %arg7[%c0_171, %c37_172] : memref<1x384xf32, #tpu.memory_space<vmem>>, vector<1x256xf32>
    %415 = vector.broadcast %409 : f32 to vector<1x256xf32>
    %416 = arith.mulf %415, %414 : vector<1x256xf32>
    %417 = arith.addf %413, %416 : vector<1x256xf32>
    %c26 = arith.constant 26 : index
    %418 = memref.load %arg2[%c26] : memref<98xf32, #tpu.memory_space<smem>>
    %c75 = arith.constant 75 : index
    %419 = memref.load %arg2[%c75] : memref<98xf32, #tpu.memory_space<smem>>
    %c0_173 = arith.constant 0 : index
    %c53_174 = arith.constant 53 : index
    %420 = vector.load %arg6[%c0_173, %c53_174] : memref<1x384xf32, #tpu.memory_space<vmem>>, vector<1x256xf32>
    %421 = vector.broadcast %418 : f32 to vector<1x256xf32>
    %422 = arith.mulf %421, %420 : vector<1x256xf32>
    %423 = arith.addf %417, %422 : vector<1x256xf32>
    %c0_175 = arith.constant 0 : index
    %c53_176 = arith.constant 53 : index
    %424 = vector.load %arg7[%c0_175, %c53_176] : memref<1x384xf32, #tpu.memory_space<vmem>>, vector<1x256xf32>
    %425 = vector.broadcast %419 : f32 to vector<1x256xf32>
    %426 = arith.mulf %425, %424 : vector<1x256xf32>
    %427 = arith.addf %423, %426 : vector<1x256xf32>
    %c33_177 = arith.constant 33 : index
    %428 = memref.load %arg2[%c33_177] : memref<98xf32, #tpu.memory_space<smem>>
    %c82_178 = arith.constant 82 : index
    %429 = memref.load %arg2[%c82_178] : memref<98xf32, #tpu.memory_space<smem>>
    %c0_179 = arith.constant 0 : index
    %c69 = arith.constant 69 : index
    %430 = vector.load %arg6[%c0_179, %c69] : memref<1x384xf32, #tpu.memory_space<vmem>>, vector<1x256xf32>
    %431 = vector.broadcast %428 : f32 to vector<1x256xf32>
    %432 = arith.mulf %431, %430 : vector<1x256xf32>
    %433 = arith.addf %427, %432 : vector<1x256xf32>
    %c0_180 = arith.constant 0 : index
    %c69_181 = arith.constant 69 : index
    %434 = vector.load %arg7[%c0_180, %c69_181] : memref<1x384xf32, #tpu.memory_space<vmem>>, vector<1x256xf32>
    %435 = vector.broadcast %429 : f32 to vector<1x256xf32>
    %436 = arith.mulf %435, %434 : vector<1x256xf32>
    %437 = arith.addf %433, %436 : vector<1x256xf32>
    %c40 = arith.constant 40 : index
    %438 = memref.load %arg2[%c40] : memref<98xf32, #tpu.memory_space<smem>>
    %c89 = arith.constant 89 : index
    %439 = memref.load %arg2[%c89] : memref<98xf32, #tpu.memory_space<smem>>
    %c0_182 = arith.constant 0 : index
    %c85_183 = arith.constant 85 : index
    %440 = vector.load %arg6[%c0_182, %c85_183] : memref<1x384xf32, #tpu.memory_space<vmem>>, vector<1x256xf32>
    %441 = vector.broadcast %438 : f32 to vector<1x256xf32>
    %442 = arith.mulf %441, %440 : vector<1x256xf32>
    %443 = arith.addf %437, %442 : vector<1x256xf32>
    %c0_184 = arith.constant 0 : index
    %c85_185 = arith.constant 85 : index
    %444 = vector.load %arg7[%c0_184, %c85_185] : memref<1x384xf32, #tpu.memory_space<vmem>>, vector<1x256xf32>
    %445 = vector.broadcast %439 : f32 to vector<1x256xf32>
    %446 = arith.mulf %445, %444 : vector<1x256xf32>
    %447 = arith.addf %443, %446 : vector<1x256xf32>
    %c47 = arith.constant 47 : index
    %448 = memref.load %arg2[%c47] : memref<98xf32, #tpu.memory_space<smem>>
    %c96_186 = arith.constant 96 : index
    %449 = memref.load %arg2[%c96_186] : memref<98xf32, #tpu.memory_space<smem>>
    %c0_187 = arith.constant 0 : index
    %c101 = arith.constant 101 : index
    %450 = vector.load %arg6[%c0_187, %c101] : memref<1x384xf32, #tpu.memory_space<vmem>>, vector<1x256xf32>
    %451 = vector.broadcast %448 : f32 to vector<1x256xf32>
    %452 = arith.mulf %451, %450 : vector<1x256xf32>
    %453 = arith.addf %447, %452 : vector<1x256xf32>
    %c0_188 = arith.constant 0 : index
    %c101_189 = arith.constant 101 : index
    %454 = vector.load %arg7[%c0_188, %c101_189] : memref<1x384xf32, #tpu.memory_space<vmem>>, vector<1x256xf32>
    %455 = vector.broadcast %449 : f32 to vector<1x256xf32>
    %456 = arith.mulf %455, %454 : vector<1x256xf32>
    %457 = arith.addf %453, %456 : vector<1x256xf32>
    %c5_190 = arith.constant 5 : index
    %c0_191 = arith.constant 0 : index
    %458 = vector.load %arg3[%c5_190, %c0_191] : memref<7x256xf32, #tpu.memory_space<vmem>>, vector<1x256xf32>
    %459 = arith.mulf %457, %458 : vector<1x256xf32>
    %460 = arith.addf %386, %459 : vector<1x256xf32>
    %cst_192 = arith.constant 0.000000e+00 : f32
    %461 = vector.broadcast %cst_192 : f32 to vector<1x256xf32>
    %c6 = arith.constant 6 : index
    %462 = memref.load %arg2[%c6] : memref<98xf32, #tpu.memory_space<smem>>
    %c55 = arith.constant 55 : index
    %463 = memref.load %arg2[%c55] : memref<98xf32, #tpu.memory_space<smem>>
    %c0_193 = arith.constant 0 : index
    %c6_194 = arith.constant 6 : index
    %464 = vector.load %arg6[%c0_193, %c6_194] : memref<1x384xf32, #tpu.memory_space<vmem>>, vector<1x256xf32>
    %465 = vector.broadcast %462 : f32 to vector<1x256xf32>
    %466 = arith.mulf %465, %464 : vector<1x256xf32>
    %467 = arith.addf %461, %466 : vector<1x256xf32>
    %c0_195 = arith.constant 0 : index
    %c6_196 = arith.constant 6 : index
    %468 = vector.load %arg7[%c0_195, %c6_196] : memref<1x384xf32, #tpu.memory_space<vmem>>, vector<1x256xf32>
    %469 = vector.broadcast %463 : f32 to vector<1x256xf32>
    %470 = arith.mulf %469, %468 : vector<1x256xf32>
    %471 = arith.addf %467, %470 : vector<1x256xf32>
    %c13 = arith.constant 13 : index
    %472 = memref.load %arg2[%c13] : memref<98xf32, #tpu.memory_space<smem>>
    %c62 = arith.constant 62 : index
    %473 = memref.load %arg2[%c62] : memref<98xf32, #tpu.memory_space<smem>>
    %c0_197 = arith.constant 0 : index
    %c22_198 = arith.constant 22 : index
    %474 = vector.load %arg6[%c0_197, %c22_198] : memref<1x384xf32, #tpu.memory_space<vmem>>, vector<1x256xf32>
    %475 = vector.broadcast %472 : f32 to vector<1x256xf32>
    %476 = arith.mulf %475, %474 : vector<1x256xf32>
    %477 = arith.addf %471, %476 : vector<1x256xf32>
    %c0_199 = arith.constant 0 : index
    %c22_200 = arith.constant 22 : index
    %478 = vector.load %arg7[%c0_199, %c22_200] : memref<1x384xf32, #tpu.memory_space<vmem>>, vector<1x256xf32>
    %479 = vector.broadcast %473 : f32 to vector<1x256xf32>
    %480 = arith.mulf %479, %478 : vector<1x256xf32>
    %481 = arith.addf %477, %480 : vector<1x256xf32>
    %c20_201 = arith.constant 20 : index
    %482 = memref.load %arg2[%c20_201] : memref<98xf32, #tpu.memory_space<smem>>
    %c69_202 = arith.constant 69 : index
    %483 = memref.load %arg2[%c69_202] : memref<98xf32, #tpu.memory_space<smem>>
    %c0_203 = arith.constant 0 : index
    %c38_204 = arith.constant 38 : index
    %484 = vector.load %arg6[%c0_203, %c38_204] : memref<1x384xf32, #tpu.memory_space<vmem>>, vector<1x256xf32>
    %485 = vector.broadcast %482 : f32 to vector<1x256xf32>
    %486 = arith.mulf %485, %484 : vector<1x256xf32>
    %487 = arith.addf %481, %486 : vector<1x256xf32>
    %c0_205 = arith.constant 0 : index
    %c38_206 = arith.constant 38 : index
    %488 = vector.load %arg7[%c0_205, %c38_206] : memref<1x384xf32, #tpu.memory_space<vmem>>, vector<1x256xf32>
    %489 = vector.broadcast %483 : f32 to vector<1x256xf32>
    %490 = arith.mulf %489, %488 : vector<1x256xf32>
    %491 = arith.addf %487, %490 : vector<1x256xf32>
    %c27 = arith.constant 27 : index
    %492 = memref.load %arg2[%c27] : memref<98xf32, #tpu.memory_space<smem>>
    %c76 = arith.constant 76 : index
    %493 = memref.load %arg2[%c76] : memref<98xf32, #tpu.memory_space<smem>>
    %c0_207 = arith.constant 0 : index
    %c54_208 = arith.constant 54 : index
    %494 = vector.load %arg6[%c0_207, %c54_208] : memref<1x384xf32, #tpu.memory_space<vmem>>, vector<1x256xf32>
    %495 = vector.broadcast %492 : f32 to vector<1x256xf32>
    %496 = arith.mulf %495, %494 : vector<1x256xf32>
    %497 = arith.addf %491, %496 : vector<1x256xf32>
    %c0_209 = arith.constant 0 : index
    %c54_210 = arith.constant 54 : index
    %498 = vector.load %arg7[%c0_209, %c54_210] : memref<1x384xf32, #tpu.memory_space<vmem>>, vector<1x256xf32>
    %499 = vector.broadcast %493 : f32 to vector<1x256xf32>
    %500 = arith.mulf %499, %498 : vector<1x256xf32>
    %501 = arith.addf %497, %500 : vector<1x256xf32>
    %c34_211 = arith.constant 34 : index
    %502 = memref.load %arg2[%c34_211] : memref<98xf32, #tpu.memory_space<smem>>
    %c83_212 = arith.constant 83 : index
    %503 = memref.load %arg2[%c83_212] : memref<98xf32, #tpu.memory_space<smem>>
    %c0_213 = arith.constant 0 : index
    %c70_214 = arith.constant 70 : index
    %504 = vector.load %arg6[%c0_213, %c70_214] : memref<1x384xf32, #tpu.memory_space<vmem>>, vector<1x256xf32>
    %505 = vector.broadcast %502 : f32 to vector<1x256xf32>
    %506 = arith.mulf %505, %504 : vector<1x256xf32>
    %507 = arith.addf %501, %506 : vector<1x256xf32>
    %c0_215 = arith.constant 0 : index
    %c70_216 = arith.constant 70 : index
    %508 = vector.load %arg7[%c0_215, %c70_216] : memref<1x384xf32, #tpu.memory_space<vmem>>, vector<1x256xf32>
    %509 = vector.broadcast %503 : f32 to vector<1x256xf32>
    %510 = arith.mulf %509, %508 : vector<1x256xf32>
    %511 = arith.addf %507, %510 : vector<1x256xf32>
    %c41 = arith.constant 41 : index
    %512 = memref.load %arg2[%c41] : memref<98xf32, #tpu.memory_space<smem>>
    %c90 = arith.constant 90 : index
    %513 = memref.load %arg2[%c90] : memref<98xf32, #tpu.memory_space<smem>>
    %c0_217 = arith.constant 0 : index
    %c86_218 = arith.constant 86 : index
    %514 = vector.load %arg6[%c0_217, %c86_218] : memref<1x384xf32, #tpu.memory_space<vmem>>, vector<1x256xf32>
    %515 = vector.broadcast %512 : f32 to vector<1x256xf32>
    %516 = arith.mulf %515, %514 : vector<1x256xf32>
    %517 = arith.addf %511, %516 : vector<1x256xf32>
    %c0_219 = arith.constant 0 : index
    %c86_220 = arith.constant 86 : index
    %518 = vector.load %arg7[%c0_219, %c86_220] : memref<1x384xf32, #tpu.memory_space<vmem>>, vector<1x256xf32>
    %519 = vector.broadcast %513 : f32 to vector<1x256xf32>
    %520 = arith.mulf %519, %518 : vector<1x256xf32>
    %521 = arith.addf %517, %520 : vector<1x256xf32>
    %c48_221 = arith.constant 48 : index
    %522 = memref.load %arg2[%c48_221] : memref<98xf32, #tpu.memory_space<smem>>
    %c97_222 = arith.constant 97 : index
    %523 = memref.load %arg2[%c97_222] : memref<98xf32, #tpu.memory_space<smem>>
    %c0_223 = arith.constant 0 : index
    %c102 = arith.constant 102 : index
    %524 = vector.load %arg6[%c0_223, %c102] : memref<1x384xf32, #tpu.memory_space<vmem>>, vector<1x256xf32>
    %525 = vector.broadcast %522 : f32 to vector<1x256xf32>
    %526 = arith.mulf %525, %524 : vector<1x256xf32>
    %527 = arith.addf %521, %526 : vector<1x256xf32>
    %c0_224 = arith.constant 0 : index
    %c102_225 = arith.constant 102 : index
    %528 = vector.load %arg7[%c0_224, %c102_225] : memref<1x384xf32, #tpu.memory_space<vmem>>, vector<1x256xf32>
    %529 = vector.broadcast %523 : f32 to vector<1x256xf32>
    %530 = arith.mulf %529, %528 : vector<1x256xf32>
    %531 = arith.addf %527, %530 : vector<1x256xf32>
    %c6_226 = arith.constant 6 : index
    %c0_227 = arith.constant 0 : index
    %532 = vector.load %arg3[%c6_226, %c0_227] : memref<7x256xf32, #tpu.memory_space<vmem>>, vector<1x256xf32>
    %533 = arith.mulf %531, %532 : vector<1x256xf32>
    %534 = arith.addf %460, %533 : vector<1x256xf32>
    %535 = arith.negf %534 : vector<1x256xf32>
    %536 = math.exp %535 : vector<1x256xf32>
    %cst_228 = arith.constant 1.000000e+00 : f32
    %537 = vector.broadcast %cst_228 : f32 to vector<1x256xf32>
    %538 = arith.addf %537, %536 : vector<1x256xf32>
    %539 = arith.divf %537, %538 : vector<1x256xf32>
    %540 = vector.shape_cast %539 : vector<1x256xf32> to vector<1x1x256xf32>
    %c0_229 = arith.constant 0 : index
    %c0_230 = arith.constant 0 : index
    %c0_231 = arith.constant 0 : index
    %541 = vector.load %arg5[%c0_229, %c0_230, %c0_231] : memref<1x1x256xf32, #tpu.memory_space<vmem>>, vector<1x1x256xf32>
    tpu.vector_store %arg5[%c0_229, %c0_230, %c0_231], %540 {strides = array<i32>} : memref<1x1x256xf32, #tpu.memory_space<vmem>>, vector<1x1x256xf32>,
    return
  }
  func.func @transform_0(%arg0: i32, %arg1: i32) -> i32 {
    %c0_i32 = arith.constant 0 : i32
    %c0_i32_0 = arith.constant 0 : i32
    return %c0_i32 : i32
  }
  func.func @transform_1(%arg0: i32, %arg1: i32) -> (i32, i32) {
    %c0_i32 = arith.constant 0 : i32
    %c0_i32_0 = arith.constant 0 : i32
    %c0_i32_1 = arith.constant 0 : i32
    return %c0_i32, %c0_i32_0 : i32, i32
  }
  func.func @transform_2(%arg0: i32, %arg1: i32) -> (i32, i32, i32) {
    %c0_i32 = arith.constant 0 : i32
    %c0_i32_0 = arith.constant 0 : i32
    return %arg0, %arg1, %c0_i32 : i32, i32, i32
  }
  func.func @transform_3(%arg0: i32, %arg1: i32) -> (i32, i32, i32) {
    %c0_i32 = arith.constant 0 : i32
    %c0_i32_0 = arith.constant 0 : i32
    %c0_i32_1 = arith.constant 0 : i32
    return %arg0, %c0_i32, %c0_i32_0 : i32, i32, i32
  }
}

</mosaic_0001>

<bundles_post_ra>
// kernel: tpu_custom_call.1
= control target key start
LH: loop header
LB: loop body
LE: loop exit
PB: predicated region body
PF: predicated region fallthrough
CT: control target
= control target key end

     0   :  { %s2708_s0 = inlined_call_operand.hbm [shape: f32[98], index: 0, kind: input, shape index: {}]   ;;  %s2709_s1 = inlined_call_operand.hbm [shape: f32[7,256], index: 1, kind: input, shape index: {}]   ;;  %s2710_s2 = inlined_call_operand.hbm [shape: f32[2,4,256], index: 2, kind: input, shape index: {}]   ;;  %s2711_s3 = inlined_call_operand.hbm [shape: f32[2,1,256], index: 3, kind: output, shape index: {}]  }
   0x1   :  { %2718 = sst [smem:[#allocation18_spill]] %s2708_s0 }
   0x2   :  { %2719 = sst [smem:[#allocation19_spill]] %s2709_s1 }
   0x3   :  { %2720 = sst [smem:[#allocation20_spill]] %s2710_s2 }
   0x4   :  { %8 = vsyncpa [#allocation7], 0 }
   0x5   :  { %9 = vsyncpa [#allocation5], 0 }
   0x6   :  { %10 = vsyncpa [#allocation10], 0 }
   0x7   :  { %12 = vsyncpa [#allocation10 + $0x1], 0 }
   0x8   :  { %13 = vsyncpa [#allocation6], 0 }
   0x9   :  { %15 = vsyncpa [#allocation6 + $0x1], 0  ;;  %s1890_s12 = smov 0   ;;  %s1892_s13 = smov 0  }
   0xa   :  { %s1894_s14 = smov 0   ;;  %s1896_s15 = smov 0  }
   0xb   :  { %s1898_s16 = smov 0   ;;  %s1900_s17 = smov 0  }
   0xc LB: > { %2721 = sst [smem:[#allocation16_spill]] %s1840_s16  ;;  %s1456_s18 = sadd.s32 4294967295, %s1844_s17   ;;  %s1844_s17 = sphi %s1900_s17, %s21_s17   ;;  %s1840_s16 = sphi %s1898_s16, %s2743_s16   ;;  %s1836_s15 = sphi %s1896_s15, %s2742_s15   ;;  %s1832_s14 = sphi %s1894_s14, %s2746_s14   ;;  %s1828_s13 = sphi %s1892_s13, %s2745_s13   ;;  %s1824_s12 = sphi %s1890_s12, %s2744_s12  }
   0xd   : > { %s1457_s19 = sadd.s32 4294967294, %s1844_s17   ;;  %p97_p0 = scmp.ne.s32.totalorder %s1828_s13, %s1824_s12 }
   0xe   : > { %p1924_p1 = scmp.eq.s32.totalorder %s1456_s18, 0  ;;  %p1928_p2 = scmp.eq.s32.totalorder %s1456_s18, 1 }
   0xf   : > { %p127_p3 = scmp.eq.s32.totalorder %s1457_s19, 1  ;;  %p1458_p5 = scmp.ge.s32.totalorder %s1844_s17, 1 }
  0x10   : > { %s2722_s20 = scalar_select %p1924_p1, 1, 0 }
  0x11   : > { %p1934_p4 = por %p1924_p1, %p97_p0  ;;  %p1939_p6 = por %p127_p3, %p97_p0 }
  0x12   : > { %p134_p7 = scmp.lt.s32.totalorder %s1844_s17, 3  ;;  %s1846_s25 = smov [#allocation8]  }
  0x13   : > { %s2724_s22 = scalar_select %p1934_p4, 1, 0 }
  0x14   : > { %s2725_s23 = scalar_select %p1939_p6, 1, 0 }
  0x15   : > { %p1944_p8 = pnand %p1458_p5, %p134_p7  ;;  %s156_s26 = sshll.u32 %s1846_s25, 4  ;;  %s1951_s26 = int_to_ptr.vmem [resolvable:$true] %s156_s26 }
  0x16   : > { %s33_s28 = sadd.s32 1, %s1840_s16  ;;  %s2729_s0 = sld [smem:[#allocation18_spill]] }
  0x17   : > { %s2726_s24 = scalar_select %p1944_p8, 1, 0 }
  0x18   : > { %p1587_p10 = pneg %p1944_p8  ;;  %p1962_p12 = scmp.ge.s32.totalorder %s33_s28, 2 }
  0x1a   : > { %p1955_p11 = pnand %p1587_p10, %p1924_p1 }
  0x1c   : > { %s1683_s5 = scalar_lea.hbm %s2729_s0, 16  ;;  %p1685_p0 = pneg %p1955_p11 }
  0x1d   : > { %p1684_p13 = scmp.ne.s32.totalorder %s2729_s0, %s1683_s5  ;;  %p1690_p7 = scmp.lt.u32.totalorder %s1683_s5, %s2729_s0 }
  0x1f   : > { %p1686_p3 = pnand %p1685_p0, %p1684_p13 }
  0x21   : > { %p1687_p5 = pneg %p1686_p3 }
  0x23   : > { %p1692_p10 = pnand %p1690_p7, %p1687_p5 }
  0x25   : > { %1695 = shalt.err (!%p1692_p10)
}
  0x26   : > { %s1847_s10 = smov [#allocation4]   ;;  %s2730_s1 = sld [smem:[#allocation19_spill]] }
  0x27   : > { %1590 = dma.hbm_to_smem (!%p1955_p11), %s2729_s0, 16, %s1847_s10, [#allocation7]  }
  0x2c   : > { %s1696_s30 = scalar_lea.hbm %s2730_s1, 256 }
  0x2d   : > { %p1697_p13 = scmp.ne.s32.totalorder %s2730_s1, %s1696_s30  ;;  %p1703_p7 = scmp.lt.u32.totalorder %s1696_s30, %s2730_s1 }
  0x2f   : > { %p1699_p3 = pnand %p1697_p13, %p1685_p0 }
  0x31   : > { %p1700_p5 = pneg %p1699_p3 }
  0x33   : > { %p1705_p10 = pnand %p1703_p7, %p1700_p5 }
  0x35   : > { %1708 = shalt.err (!%p1705_p10)
}
  0x36   : > { %s1709_s8 = scalar_lea.vmem %s1951_s26, 256  ;;  %p1717_p1 = scmp.lt.s32.totalorder %s1951_s26, %s1951_s26 }
  0x37   : > { %p1710_p9 = scmp.ne.s32.totalorder %s1951_s26, %s1709_s8  ;;  %p1718_p13 = scmp.lt.s32.totalorder %s1709_s8, %s1709_s8 }
  0x39   : > { %p1712_p6 = pnand %p1710_p9, %p1685_p0  ;;  %p1719_p3 = por %p1718_p13, %p1717_p1 }
  0x3b   : > { %p1713_p4 = pneg %p1712_p6 }
  0x3d   : > { %p1720_p8 = pnand %p1719_p3, %p1713_p4 }
  0x3f   : > { %1723 = shalt.err (!%p1720_p8)
}
  0x40   : > { %1593 = dma.hbm_to_vmem [thread:$0]  (!%p1955_p11), %s2730_s1, 256, %s1951_s26, [#allocation5]  }
  0x41   : > { %s2748_s28 = smov (%p1962_p12, %s33_s28), 0  ;;  %s84_s27 = sadd.s32 1, %s1832_s14 }
  0x42   : > { %2731 = sst [smem:[#allocation17_spill]] %s2748_s28  ;;  %p91_p1 = scmp.ne.s32.totalorder %s1832_s14, %s1828_s13 }
  0x43   : > { %s79_s11 = ssub.s32 %s1840_s16, %s2748_s28  ;;  %p92_p4 = scmp.eq.s32.totalorder %s1844_s17, 0 }
  0x44   : > { %p82_p6 = scmp.eq.s32.totalorder %s79_s11, 0  ;;  %p2024_p8 = por %p1928_p2, %p91_p1 }
  0x45   : > { %p93_p9 = por %p92_p4, %p91_p1  ;;  %p1604_p0 = scmp.lt.s32.totalorder %s1844_s17, 2 }
  0x46   : > { %s2030_s19 = scalar_select %p82_p6, %s1832_s14, %s84_s27  }
  0x47   : > { %s167_s26 = sand.u32 1, %s1832_s14   ;;  %s1573_s25 = sshll.u32 %s1840_s16, 7 }
  0x48   : > { %s1462_s29 = sshll.u32 %s167_s26, 3  ;;  %s2733_s2 = sld [smem:[#allocation20_spill]] }
  0x49   : > { %s171_s21 = scalar_lea.vmem [#allocation9], %s1462_s29  ;;  %p2039_p2 = pnand %p1604_p0, %p93_p9 }
  0x4a   : > { %s181_s5 = sshll.u32 %s171_s21, 4  ;;  %s168_s8 = scalar_lea.sflag [#allocation10], %s167_s26  ;;  %s2043_s5 = int_to_ptr.vmem [resolvable:$true] %s181_s5 }
  0x4b   : > { %p1726_p12 = pneg %p2039_p2 }
  0x4e   : > { %s2037_s6 = scalar_lea.hbm %s2733_s2, %s1573_s25  ;;  %s1729_s11 = scalar_lea.hbm %s2733_s2, 256 }
  0x4f   : > { %s1724_s9 = scalar_lea.hbm %s2037_s6, 128  ;;  %p1730_p10 = scmp.lt.u32.totalorder %s2037_s6, %s2733_s2 }
  0x50   : > { %p1725_p11 = scmp.ne.s32.totalorder %s2037_s6, %s1724_s9  ;;  %p1731_p13 = scmp.lt.u32.totalorder %s1729_s11, %s1724_s9 }
  0x51   : > { %p1733_p1 = scmp.lt.u32.totalorder %s1724_s9, %s2037_s6 }
  0x52   : > { %p1727_p5 = pnand %p1726_p12, %p1725_p11  ;;  %p1732_p3 = por %p1731_p13, %p1730_p10 }
  0x54   : > { %p1728_p7 = pneg %p1727_p5  ;;  %p1734_p4 = por %p1733_p1, %p1732_p3 }
  0x56   : > { %p1735_p6 = pnand %p1734_p4, %p1728_p7 }
  0x58   : > { %1738 = shalt.err (!%p1735_p6)
}
  0x59   : > { %s1739_s26 = scalar_lea.vmem %s2043_s5, 128  ;;  %s1848_s30 = smov [#allocation9]  }
  0x5a   : > { %p1740_p9 = scmp.ne.s32.totalorder %s2043_s5, %s1739_s26  ;;  %s1744_s4 = sshll.u32 %s1848_s30, 4  ;;  %s1745_s4 = int_to_ptr.vmem [resolvable:$false] %s1744_s4 }
  0x5b   : > { %s1746_s21 = scalar_lea.vmem %s1745_s4, 256  ;;  %p1747_p5 = scmp.lt.s32.totalorder %s2043_s5, %s1745_s4 }
  0x5c   : > { %p1742_p0 = pnand %p1740_p9, %p1726_p12  ;;  %p1748_p10 = scmp.lt.s32.totalorder %s1746_s21, %s1739_s26 }
  0x5e   : > { %p1743_p11 = pneg %p1742_p0  ;;  %p1749_p13 = por %p1748_p10, %p1747_p5 }
  0x60   : > { %p1750_p3 = pnand %p1749_p13, %p1743_p11 }
  0x62   : > { %1753 = shalt.err (!%p1750_p3)
}
  0x63   : > { %1597 = dma.hbm_to_vmem [thread:$0]  (!%p2039_p2), %s2037_s6, 128, %s2043_s5, %s168_s8  }
  0x64   : > { %p2735_p7 = scmp.ne.s32.totalorder %s2726_s24, 0 }
  0x65   : > { %p2736_p12 = scmp.ne.s32.totalorder (!%p2735_p7), %s2722_s20, 0 }
  0x66   : > { %190 = sbr.rel (%p2735_p7) target bundleno = 702 (0x2be), region = 32 }
  0x6d   : > { %1807 = dma.done.wait (%p2736_p12), [#allocation7], 16  }
  0x6e   : > { %1809 = vsyncadd (%p2736_p12), [#allocation7], 4294967280 }
  0x6f   : > { %1811 = dma.done.wait (%p2736_p12), [#allocation5], 256  }
  0x70   : > { %1813 = vsyncadd (%p2736_p12), [#allocation5], 4294967040  ;;  %s2081_s7 = sand.u32 1, %s1828_s13   ;;  %p2737_p2 = scmp.ne.s32.totalorder %s2724_s22, 0 }
  0x71   : > { %s1468_s24 = sshll.u32 %s2081_s7, 3  ;;  %s201_s6 = scalar_lea.sflag [#allocation10], %s2081_s7 }
  0x72   : > { %s204_s5 = scalar_lea.vmem [#allocation9], %s1468_s24 }
  0x73   : > { %1815 = dma.done.wait (%p2737_p2), %s201_s6, 128  }
  0x74   : > { %1817 = vsyncadd (%p2737_p2), %s201_s6, 4294967168 }
  0x75   : > { %209 = sfence }
  0x76   : > { %v593_v0 = vld [vmem:[#allocation8 + $0x1] ss:$8 sm:$0x3]  ;;  %v228_v1 = vld [vmem:[%s204_s5] sm:$0xff]  ;;  %s1849_s8 = smov 1   ;;  %vm233_vm0 = vcmask 1043456   ;;  %v267_v5 = vlaneseq }
  0x77   : > { %595 = vrot.lane.b32.xlu0 %v593_v0, %s1849_s8  ;;  %v739_v2 = vld [vmem:[#allocation8 + $0x2] ss:$8 sm:$0x3]  ;;  %v231_v3 = vcombine.high %v228_v1, %v228_v1  ;;  %v234_v4 = vsel %vm233_vm0, %v228_v1, -inf  ;;  %v251_v6 = vsel %vm233_vm0, %v228_v1, 0.0  ;;  %s1850_s20 = smov 2  }
  0x78   : > { %v235_v7 = vrot.slane %v234_v4, 4  ;;  %v252_v9 = vrot.slane %v251_v6, 4  ;;  %vm269_vm1 = vcmp.lt.s32.totalorder %v267_v5, 384  ;;  %v1851_v16 = vmov 1966171168   ;;  %s1853_s22 = smov 4  }
  0x79   : > { %v241_v8 = vsel %vm233_vm0, %v231_v3, -inf  ;;  %v258_v10 = vsel %vm233_vm0, %v231_v3, 0.0  ;;  %v277_v17 = vunpack.c.l.s4 %v1851_v16  ;;  %v1852_v21 = vmov 0.0   ;;  %v1021_v40 = vld [vmem:[#allocation8 + $0x4] ss:$8 sm:$0x3] }
  0x7a   : > { %v242_v11 = vrot.slane %v241_v8, 4  ;;  %v259_v12 = vrot.slane %v258_v10, 4  ;;  %v236_v13 = vmax.f32 %v234_v4, %v235_v7  ;;  %v253_v14 = vadd.f32 %v252_v9, %v251_v6  ;;  %271 = vst.msk [vmem:[#allocation2] sm:$0x7] %vm269_vm1, %v1852_v21  ;;  %272 = vst.msk [vmem:[#allocation3] sm:$0x7] %vm269_vm1, %v1852_v21  ;;  %1023 = vrot.lane.b32.xlu1 %v1021_v40, %s1853_s22 }
  0x7b   : > { %741 = vrot.lane.b32.xlu0 %v739_v2, %s1850_s20  ;;  %v278_v27 = vunpack.c.0.s8 %v277_v17  ;;  %v280_v28 = vshrl.u32 %v267_v5, 7  ;;  %s1854_s9 = smov 51   ;;  %vm2096_vm2 = vcmp.ge.s32.totalorder %v267_v5, 51  ;;  %vm297_vm3 = vcmp.lt.s32.totalorder %v267_v5, 307  ;;  %s1485_s10 = sld [smem:[#allocation4 + $0x8]] }
  0x7c   : > { %v243_v15 = vmax.f32 %v241_v8, %v242_v11  ;;  %v260_v18 = vadd.f32 %v259_v12, %v258_v10  ;;  %v237_v19 = vrot.slane %v236_v13, 2  ;;  %v254_v20 = vrot.slane %v253_v14, 2  ;;  %vm298_vm5 = vmand %vm2096_vm2, %vm297_vm3  ;;  %s1471_s27 = sld [smem:[#allocation4 + $0x7]]  ;;  %s1499_s11 = sld [smem:[#allocation4 + $0x9]] }
  0x7d   : > { %v281_v37 = vsub.s32 %v278_v27, %v280_v28  ;;  %vm293_vm4 = vcmask 416768   ;;  %s1487_s25 = sld [smem:[#allocation4 + $0xf]]  ;;  %s2103_s29 = sld [smem:[#allocation4 + $0x10]]  ;;  %vm342_vm6 = vcmask 916480   ;;  %vm364_vm7 = vcmask 785408  }
  0x7e   : > { %v244_v22 = vrot.slane %v243_v15, 2  ;;  %v261_v23 = vrot.slane %v260_v18, 2  ;;  %v238_v24 = vmax.f32 %v236_v13, %v237_v19  ;;  %v255_v25 = vadd.f32 %v254_v20, %v253_v14  ;;  %s2105_s26 = sld [smem:[#allocation4 + $0xa]]  ;;  %s2111_s30 = sld [smem:[#allocation4 + $0xb]] }
  0x7f   : > { %s2113_s4 = sld [smem:[#allocation4 + $0x16]]  ;;  %s2115_s21 = sld [smem:[#allocation4 + $0x11]]  ;;  %vm385_vm8 = vcmask 654336   ;;  %vm406_vm9 = vcmask 523264   ;;  %vm427_vm10 = vcmask 392192   ;;  %vm448_vm11 = vcmask 261120  }
  0x80   : > { %v245_v26 = vmax.f32 %v243_v15, %v244_v22  ;;  %v262_v29 = vadd.f32 %v261_v23, %v260_v18  ;;  %v239_v30 = vrot.slane %v238_v24, 1  ;;  %v256_v31 = vrot.slane %v255_v25, 1  ;;  %s1855_s24 = smov 112   ;;  %s2119_s6 = sld [smem:[#allocation4 + $0xc]] }
  0x81   : > { %v474_v57 = vstv %s1485_s10  ;;  %s2121_s5 = sld [smem:[#allocation4 + $0x1d]]  ;;  %s2123_s8 = sld [smem:[#allocation4 + $0x17]]  ;;  %vm598_vm12 = vcmask 7168   ;;  %vm744_vm13 = vcmask 15360   ;;  %vm1026_vm14 = vcmask 31744  }
  0x82   : > { %v246_v32 = vrot.slane %v245_v26, 1  ;;  %v263_v33 = vrot.slane %v262_v29, 1  ;;  %v240_v34 = vmax.f32 %v238_v24, %v239_v30  ;;  %v257_v35 = vadd.f32 %v256_v31, %v255_v25  ;;  %s2127_s20 = sld [smem:[#allocation4 + $0x13]]  ;;  %s2129_s22 = sld [smem:[#allocation4 + $0x12]] }
  0x83   : > { %v336_v58 = vstv %s1471_s27  ;;  %v620_v62 = vstv %s1499_s11  ;;  %v494_v63 = vstv %s1487_s25  ;;  %v640_v2 = vstv %s2103_s29  ;;  %s2135_s10 = sld [smem:[#allocation4 + $0x32]]  ;;  %s1856_s27 = smov 96  }
  0x84   : > { %v247_v36 = vmax.f32 %v245_v26, %v246_v32  ;;  %v264_v38 = vadd.f32 %v263_v33, %v262_v29  ;;  %v265_v39 = vmul.f32 0.25, %v257_v35  ;;  %v766_v3 = vstv %s2105_s26  ;;  %s2139_s11 = sld [smem:[#allocation4 + $0x2]]  ;;  %s2141_s25 = sld [smem:[#allocation4 + $0x33]] }
  0x85   : > { %s2143_s0 = sld [smem:[#allocation4 + $0x3]]  ;;  %s2145_s1 = sld [smem:[#allocation4 + $0x34]]  ;;  %v902_v7 = vstv %s2111_s30  ;;  %v514_v8 = vstv %s2113_s4  ;;  %v786_v11 = vstv %s2115_s21  ;;  %vm1172_vm15 = vcmask 39936  }
  0x86   : > { %v275_v41 = vcombine.low %v240_v34, %v247_v36  ;;  %v266_v42 = vmul.f32 0.25, %v264_v38  ;;  %s2151_s29 = sld [smem:[#allocation4 + $0x4]]  ;;  %s2153_s26 = sld [smem:[#allocation4 + $0x35]]  ;;  %v1048_v12 = vstv %s2119_s6  ;;  %vm1318_vm0 = vcmask 48128  }
  0x87   : > { %s2157_s2 = sld [smem:[#allocation4 + $0x5]]  ;;  %s2159_s28 = sld [smem:[#allocation4 + $0x36]]  ;;  %v534_v14 = vstv %s2121_s5  ;;  %v660_v15 = vstv %s2123_s8  ;;  %vm606_vm1 = vcmask 1039360   ;;  %vm752_vm2 = vcmask 1031168  }
  0x88   : > { %v282_v43 = vrot.slane %v275_v41, %v281_v37  ;;  %v302_v44 = vcombine.low %v265_v39, %v266_v42  ;;  %s2161_s16 = sld [smem:[#allocation4 + $0x6]]  ;;  %s2173_s30 = sld [smem:[#allocation4 + $0x37]]  ;;  %v1068_v20 = vstv %s2127_s20  ;;  %v922_v21 = vstv %s2129_s22 }
  0x89   : > { %v469_v17 = vstv %s2135_s10  ;;  %s1857_s4 = smov 80   ;;  %s2187_s21 = sld [smem:[#allocation4 + $0x18]]  ;;  %vm888_vm3 = vcmask 1022976  }
  0x8a   : > { %v289_v45 = vrot.slane %v282_v43, %v281_v37  ;;  %v309_v46 = vrot.slane %v302_v44, %v281_v37  ;;  %v612_v18 = vstv %s2139_s11  ;;  %v615_v19 = vstv %s2141_s25  ;;  %s2189_s6 = sld [smem:[#allocation4 + $0xd]]  ;;  %s1519_s5 = sld [smem:[#allocation4 + $0x1f]] }
  0x8b   : > { %v758_v22 = vstv %s2143_s0  ;;  %v761_v23 = vstv %s2145_s1  ;;  %s2210_s0 = sld [smem:[#allocation4 + $0x24]]  ;;  %s1505_s1 = sld [smem:[#allocation4 + $0x1e]] }
  0x8c   : > { %290 = vrot.lane.b32.xlu0 %v289_v45, %s1854_s9  ;;  %v316_v47 = vrot.slane %v309_v46, %v281_v37  ;;  %v894_v30 = vstv %s2151_s29  ;;  %v897_v31 = vstv %s2153_s26  ;;  %s1557_s8 = sld [smem:[#allocation4 + $0x14]]  ;;  %s1495_s20 = sld [smem:[#allocation4 + $0x2b]] }
  0x8d   : > { %v1040_v33 = vstv %s2157_s2  ;;  %v1043_v34 = vstv %s2159_s28  ;;  %s1858_s2 = smov 64   ;;  %s1531_s28 = sld [smem:[#allocation4 + $0x19]] }
  0x8e   : > { %v1186_v38 = vstv %s2161_s16  ;;  %v1189_v46 = vstv %s2173_s30  ;;  %s1545_s16 = sld [smem:[#allocation4 + $0x1a]]  ;;  %s1507_s22 = sld [smem:[#allocation4 + $0x25]] }
  0x8f   : > { %s1547_s10 = sld [smem:[#allocation4 + $0x21]]  ;;  %s1533_s11 = sld [smem:[#allocation4 + $0x20]] }
  0x90   : > { %317 = vrot.lane.b32.xlu0 %v316_v47, %s1854_s9  ;;  %s2133_s9 = sld [smem:[#allocation4 + $0x1]]  ;;  %s1521_s25 = sld [smem:[#allocation4 + $0x26]] }
  0x91   : > { %s1559_s29 = sld [smem:[#allocation4 + $0x1b]]  ;;  %s1549_s26 = sld [smem:[#allocation4 + $0x28]] }
  0x92   : > { %s1509_s30 = sld [smem:[#allocation4 + $0x2c]] }
  0x96   : > { %v466_v16 = vstv %s2133_s9  ;;  %s1859_s9 = smov 48  }
  0xe9   : > { %v2091_v48 = vpop.permute.xlu0 %595 }
  0xed   : > { %v2093_v49 = vpop.permute.xlu0 %741 }
  0xfe   : > { %v291_v51 = vpop.permute.xlu0 %290 }
  0xff   : > { %v292_v52 = vrot.slane %v291_v51, 7 }
 0x101   : > { %v294_v53 = vsel %vm293_vm4, %v292_v52, %v291_v51 }
 0x102   : > { %299 = vst.msk [vmem:[#allocation2] sm:$0x7] %vm298_vm5, %v294_v53  ;;  %v318_v54 = vpop.permute.xlu0 %317 }
 0x103   : > { %v319_v55 = vrot.slane %v318_v54, 7 }
 0x105   : > { %v320_v56 = vsel %vm293_vm4, %v319_v55, %v318_v54  ;;  %v806_v55 = vstv %s2187_s21  ;;  %s1860_s21 = smov 32   ;;  %vm1034_vm4 = vcmask 1014784  }
 0x106   : > { %322 = vst.msk [vmem:[#allocation3] sm:$0x7] %vm298_vm5, %v320_v56  ;;  %v1194_v56 = vstv %s2189_s6  ;;  %s1537_s6 = sld [smem:[#allocation4 + $0x2e]]  ;;  %vm1180_vm5 = vcmask 1006592  }
 0x109   : > { %v2107_v59 = vld [vmem:[#allocation2] sm:$0x7] }
 0x10a   : > { %v475_v60 = vmul.f32 %v474_v57, %v2107_v59  ;;  %v337_v61 = vmul.f32 %v336_v58, %v2107_v59  ;;  %v621_v0 = vmul.f32 %v620_v62, %v2107_v59  ;;  %v495_v1 = vmul.f32 %v494_v63, %v2107_v59 }
 0x10b   : > { %v641_v4 = vmul.f32 %v640_v2, %v2107_v59  ;;  %v767_v6 = vmul.f32 %v766_v3, %v2107_v59  ;;  %v903_v9 = vmul.f32 %v902_v7, %v2107_v59  ;;  %v515_v10 = vmul.f32 %v514_v8, %v2107_v59 }
 0x10c   : > { %477 = vrot.lane.b32.xlu0 %v475_v60, %s1855_s24  ;;  %339 = vrot.lane.b32.xlu1 %v337_v61, %s1855_s24  ;;  %v787_v24 = vmul.f32 %v786_v11, %v2107_v59  ;;  %v1049_v25 = vmul.f32 %v1048_v12, %v2107_v59  ;;  %v467_v26 = vmul.f32 %v466_v16, %v2107_v59  ;;  %v554_v61 = vstv %s2210_s0  ;;  %s1535_s0 = sld [smem:[#allocation4 + $0x27]] }
 0x10d   : > { %v2167_v13 = vld [vmem:[#allocation3] sm:$0x7]  ;;  %v613_v28 = vmul.f32 %v612_v18, %v2107_v59  ;;  %v759_v36 = vmul.f32 %v758_v22, %v2107_v59  ;;  %v535_v39 = vmul.f32 %v534_v14, %v2107_v59  ;;  %v661_v40 = vmul.f32 %v660_v15, %v2107_v59 }
 0x10e   : > { %v470_v27 = vmul.f32 %v469_v17, %v2167_v13  ;;  %v616_v29 = vmul.f32 %v615_v19, %v2167_v13  ;;  %v762_v37 = vmul.f32 %v761_v23, %v2167_v13  ;;  %v895_v41 = vmul.f32 %v894_v30, %v2107_v59 }
 0x10f   : > { %v898_v42 = vmul.f32 %v897_v31, %v2167_v13  ;;  %v1041_v44 = vmul.f32 %v1040_v33, %v2107_v59  ;;  %v1044_v45 = vmul.f32 %v1043_v34, %v2167_v13  ;;  %v1069_v51 = vmul.f32 %v1068_v20, %v2107_v59 }
 0x110   : > { %623 = vrot.lane.b32.xlu0 %v621_v0, %s1855_s24  ;;  %497 = vrot.lane.b32.xlu1 %v495_v1, %s1856_s27  ;;  %v2197_v32 = vadd.f32 %v470_v27, %v467_v26  ;;  %v2201_v35 = vadd.f32 %v616_v29, %v613_v28  ;;  %v2212_v43 = vadd.f32 %v762_v37, %v759_v36  ;;  %v680_v62 = vstv %s1505_s1  ;;  %s1563_s1 = sld [smem:[#allocation4 + $0x29]] }
 0x111   : > { %v2219_v47 = vadd.f32 %v898_v42, %v895_v41  ;;  %v2221_v50 = vadd.f32 %v1044_v45, %v1041_v44  ;;  %v923_v52 = vmul.f32 %v922_v21, %v2107_v59  ;;  %v1187_v53 = vmul.f32 %v1186_v38, %v2107_v59 }
 0x112   : > { %v1190_v54 = vmul.f32 %v1189_v46, %v2167_v13  ;;  %v807_v58 = vmul.f32 %v806_v55, %v2107_v59  ;;  %v1195_v60 = vmul.f32 %v1194_v56, %v2107_v59  ;;  %v555_v63 = vmul.f32 %v554_v61, %v2107_v59 }
 0x113   : > { %v681_v0 = vmul.f32 %v680_v62, %v2107_v59  ;;  %v1088_v1 = vstv %s1545_s16  ;;  %v942_v2 = vstv %s1531_s28  ;;  %v1214_v7 = vstv %s1557_s8  ;;  %s1561_s16 = sld [smem:[#allocation4 + $0x22]]  ;;  %s1502_s8 = sld [smem:[#allocation4 + $0x41]] }
 0x114   : > { %643 = vrot.lane.b32.xlu0 %v641_v4, %s1856_s27  ;;  %769 = vrot.lane.b32.xlu1 %v767_v6, %s1855_s24  ;;  %v2231_v57 = vadd.f32 %v1190_v54, %v1187_v53  ;;  %v1089_v3 = vmul.f32 %v1088_v1, %v2107_v59  ;;  %v943_v4 = vmul.f32 %v942_v2, %v2107_v59  ;;  %v826_v6 = vstv %s1519_s5  ;;  %s1500_s28 = sld [smem:[#allocation4 + $0x3a]]  ;;  %s1523_s5 = sld [smem:[#allocation4 + $0x2d]] }
 0x115   : > { %v827_v8 = vmul.f32 %v826_v6, %v2107_v59  ;;  %v700_v11 = vstv %s1507_s22  ;;  %v1108_v15 = vstv %s1547_s10  ;;  %v962_v16 = vstv %s1533_s11  ;;  %s1528_s22 = sld [smem:[#allocation4 + $0x3c]]  ;;  %s1565_s10 = sld [smem:[#allocation4 + $0x30]] }
 0x116   : > { %v701_v14 = vmul.f32 %v700_v11, %v2107_v59  ;;  %v1109_v17 = vmul.f32 %v1108_v15, %v2107_v59  ;;  %v963_v18 = vmul.f32 %v962_v16, %v2107_v59  ;;  %v846_v19 = vstv %s1521_s25  ;;  %s1490_s11 = sld [smem:[#allocation4 + $0x47]]  ;;  %s1472_s25 = sld [smem:[#allocation4 + $0x38]] }
 0x117   : > { %v1234_v20 = vstv %s1559_s29  ;;  %v847_v21 = vmul.f32 %v846_v19, %v2107_v59  ;;  %v1128_v23 = vstv %s1549_s26  ;;  %v1002_v27 = vstv %s1537_s6  ;;  %s1542_s29 = sld [smem:[#allocation4 + $0x3d]]  ;;  %s1486_s26 = sld [smem:[#allocation4 + $0x39]] }
 0x118   : > { %905 = vrot.lane.b32.xlu0 %v903_v9, %s1855_s24  ;;  %517 = vrot.lane.b32.xlu1 %v515_v10, %s1857_s4  ;;  %v1215_v9 = vmul.f32 %v1214_v7, %v2107_v59  ;;  %v574_v10 = vstv %s1495_s20  ;;  %v1235_v22 = vmul.f32 %v1234_v20, %v2107_v59  ;;  %v982_v28 = vstv %s1535_s0  ;;  %s1551_s20 = sld [smem:[#allocation4 + $0x2f]]  ;;  %s1488_s6 = sld [smem:[#allocation4 + $0x40]] }
 0x119   : > { %v575_v12 = vmul.f32 %v574_v10, %v2107_v59  ;;  %v1003_v29 = vmul.f32 %v1002_v27, %v2107_v59  ;;  %v983_v30 = vmul.f32 %v982_v28, %v2107_v59  ;;  %v1274_v31 = vstv %s1563_s1  ;;  %s1492_s0 = sld [smem:[#allocation4 + $0x4e]]  ;;  %s1514_s1 = sld [smem:[#allocation4 + $0x3b]]  ;;  %v2318_v28 = vpop.permute.xlu1 %1023 }
 0x11a   : > { %v1254_v33 = vstv %s1561_s16  ;;  %v629_v34 = vstv %s1500_s28  ;;  %v1275_v36 = vmul.f32 %v1274_v31, %v2107_v59  ;;  %v866_v38 = vstv %s1523_s5  ;;  %s1544_s16 = sld [smem:[#allocation4 + $0x44]]  ;;  %s1504_s28 = sld [smem:[#allocation4 + $0x48]] }
 0x11b   : > { %v1255_v37 = vmul.f32 %v1254_v33, %v2107_v59  ;;  %v867_v41 = vmul.f32 %v866_v38, %v2107_v59  ;;  %v911_v45 = vstv %s1528_s22  ;;  %s1518_s5 = sld [smem:[#allocation4 + $0x49]]  ;;  %s1556_s22 = sld [smem:[#allocation4 + $0x3e]] }
 0x11c   : > { %789 = vrot.lane.b32.xlu0 %v787_v24, %s1856_s27  ;;  %1051 = vrot.lane.b32.xlu1 %v1049_v25, %s1855_s24  ;;  %v720_v24 = vstv %s1509_s30  ;;  %v1129_v25 = vmul.f32 %v1128_v23, %v2107_v59  ;;  %v523_v54 = vstv %s1490_s11  ;;  %s1516_s30 = sld [smem:[#allocation4 + $0x42]]  ;;  %s1506_s11 = sld [smem:[#allocation4 + $0x4f]] }
 0x11d   : > { %v721_v26 = vmul.f32 %v720_v24, %v2107_v59  ;;  %v347_v55 = vstv %s1472_s25  ;;  %v524_v56 = vmul.f32 %v523_v54, %v2167_v13  ;;  %v483_v61 = vstv %s1486_s26  ;;  %s1520_s25 = sld [smem:[#allocation4 + $0x50]]  ;;  %s1496_s26 = sld [smem:[#allocation4 + $0x5c]] }
 0x11e   : > { %v1148_v42 = vstv %s1551_s20  ;;  %v503_v1 = vstv %s1488_s6  ;;  %s1494_s20 = sld [smem:[#allocation4 + $0x55]]  ;;  %s1548_s6 = sld [smem:[#allocation4 + $0x52]] }
 0x11f   : > { %v1149_v46 = vmul.f32 %v1148_v42, %v2107_v59  ;;  %v775_v6 = vstv %s1514_s1  ;;  %s2324_s1 = sld [smem:[#allocation4 + $0x51]] }
 0x120   : > { %537 = vrot.lane.b32.xlu0 %v535_v39, %s1858_s2  ;;  %663 = vrot.lane.b32.xlu1 %v661_v40, %s1857_s4  ;;  %v630_v39 = vmul.f32 %v629_v34, %v2167_v13  ;;  %v649_v40 = vstv %s1502_s8  ;;  %s1530_s8 = sld [smem:[#allocation4 + $0x43]]  ;;  %v669_v10 = vstv %s1504_s28  ;;  %s2334_s28 = sld [smem:[#allocation4 + $0x4c]] }
 0x121   : > { %v650_v44 = vmul.f32 %v649_v40, %v2167_v13  ;;  %v1203_v19 = vstv %s1556_s22  ;;  %s2366_s22 = sld [smem:[#allocation4 + $0x58]] }
 0x122   : > { %v689_v23 = vstv %s1506_s11  ;;  %s1550_s11 = sld [smem:[#allocation4 + $0x59]] }
 0x123   : > { %v583_v31 = vstv %s1496_s26  ;;  %s2411_s26 = sld [smem:[#allocation4 + $0x46]] }
 0x124   : > { %1071 = vrot.lane.b32.xlu0 %v1069_v51, %s1856_s27  ;;  %925 = vrot.lane.b32.xlu1 %v923_v52, %s1856_s27  ;;  %v1294_v51 = vstv %s1565_s10  ;;  %v912_v52 = vmul.f32 %v911_v45, %v2167_v13  ;;  %s1546_s10 = sld [smem:[#allocation4 + $0x4b]]  ;;  %v1117_v40 = vstv %s1548_s6  ;;  %s1861_s6 = smov 5  }
 0x125   : > { %v1295_v53 = vmul.f32 %v1294_v51, %v2107_v59  ;;  %v1118_v51 = vmul.f32 %v1117_v40, %v2167_v13 }
 0x126   : > { %v931_v15 = vstv %s1530_s8  ;;  %s2350_s8 = sld [smem:[#allocation4 + $0x5d]] }
 0x128   : > { %809 = vrot.lane.b32.xlu0 %v807_v58, %s1857_s4  ;;  %1197 = vrot.lane.b32.xlu1 %v1195_v60, %s1855_s24  ;;  %v348_v58 = vmul.f32 %v347_v55, %v2167_v13  ;;  %v1057_v60 = vstv %s1542_s29  ;;  %s1532_s29 = sld [smem:[#allocation4 + $0x4a]]  ;;  %v971_v55 = vstv %s2324_s1  ;;  %s1862_s1 = smov 6  }
 0x129   : > { %v1058_v62 = vmul.f32 %v1057_v60, %v2167_v13 }
 0x12c   : > { %557 = vrot.lane.b32.xlu0 %v555_v63, %s1859_s9  ;;  %683 = vrot.lane.b32.xlu1 %v681_v0, %s1858_s2  ;;  %v484_v63 = vmul.f32 %v483_v61, %v2167_v13  ;;  %v795_v0 = vstv %s1516_s30  ;;  %s1558_s30 = sld [smem:[#allocation4 + $0x45]] }
 0x12d   : > { %v796_v2 = vmul.f32 %v795_v0, %v2167_v13 }
 0x12e   : > { %v951_v27 = vstv %s1532_s29  ;;  %s1524_s29 = sld [smem:[#allocation4 + $0x5e]] }
 0x130   : > { %1091 = vrot.lane.b32.xlu0 %v1089_v3, %s1857_s4  ;;  %945 = vrot.lane.b32.xlu1 %v943_v4, %s1857_s4  ;;  %v504_v3 = vmul.f32 %v503_v1, %v2167_v13  ;;  %v543_v4 = vstv %s1492_s0  ;;  %s1508_s0 = sld [smem:[#allocation4 + $0x56]]  ;;  %v1243_v1 = vstv %s2334_s28  ;;  %s1475_s28 = sld [smem:[#allocation4 + $0x15]] }
 0x131   : > { %v544_v7 = vmul.f32 %v543_v4, %v2167_v13 }
 0x132   : > { %v1223_v33 = vstv %s1558_s30  ;;  %s2413_s30 = sld [smem:[#allocation4 + $0x61]] }
 0x133   : > { %v1224_v38 = vmul.f32 %v1223_v33, %v2167_v13 }
 0x134   : > { %829 = vrot.lane.b32.xlu0 %v827_v8, %s1858_s2  ;;  %1217 = vrot.lane.b32.xlu1 %v1215_v9, %s1856_s27  ;;  %v776_v8 = vmul.f32 %v775_v6, %v2167_v13  ;;  %v1077_v9 = vstv %s1544_s16  ;;  %s2332_s16 = sld [smem:[#allocation4 + $0x5f]]  ;;  %v875_v40 = vstv %s1524_s29  ;;  %s1469_s29 = sshll.u32 %s2081_s7, 1 }
 0x135   : > { %v1078_v11 = vmul.f32 %v1077_v9, %v2167_v13 }
 0x138   : > { %577 = vrot.lane.b32.xlu0 %v575_v12, %s1860_s21  ;;  %703 = vrot.lane.b32.xlu1 %v701_v14, %s1859_s9  ;;  %v670_v12 = vmul.f32 %v669_v10, %v2167_v13  ;;  %v815_v14 = vstv %s1518_s5  ;;  %s2348_s5 = sld [smem:[#allocation4 + $0x5a]]  ;;  %v729_v10 = vstv %s2350_s8  ;;  %s1477_s8 = sld [smem:[#allocation4 + $0x1c]] }
 0x139   : > { %v816_v16 = vmul.f32 %v815_v14, %v2167_v13 }
 0x13a   : > { %v1011_v0 = vstv %s2332_s16  ;;  %s1480_s16 = sld [smem:[#allocation4 + $0x54]] }
 0x13b   : > { %v1012_v6 = vmul.f32 %v1011_v0, %v2167_v13 }
 0x13c   : > { %1111 = vrot.lane.b32.xlu0 %v1109_v17, %s1858_s2  ;;  %965 = vrot.lane.b32.xlu1 %v963_v18, %s1858_s2  ;;  %v932_v17 = vmul.f32 %v931_v15, %v2167_v13  ;;  %v563_v18 = vstv %s1494_s20  ;;  %s2364_s20 = sld [smem:[#allocation4 + $0x60]] }
 0x13d   : > { %v564_v20 = vmul.f32 %v563_v18, %v2167_v13 }
 0x13e   : > { %v1283_v9 = vstv %s2348_s5  ;;  %s1482_s5 = sld [smem:[#allocation4 + $0x5b]] }
 0x13f   : > { %v1284_v15 = vmul.f32 %v1283_v9, %v2167_v13 }
 0x140   : > { %849 = vrot.lane.b32.xlu0 %v847_v21, %s1859_s9  ;;  %1237 = vrot.lane.b32.xlu1 %v1235_v22, %s1857_s4  ;;  %v1204_v21 = vmul.f32 %v1203_v19, %v2167_v13  ;;  %v1097_v22 = vstv %s1546_s10  ;;  %s1562_s10 = sld [smem:[#allocation4 + $0x53]]  ;;  %v991_v19 = vstv %s2366_s22  ;;  %s1481_s22 = sld [smem:[#allocation4 + $0x2a]] }
 0x141   : > { %v1098_v24 = vmul.f32 %v1097_v22, %v2167_v13 }
 0x142   : > { %v1157_v18 = vstv %s2364_s20  ;;  %s1479_s20 = sld [smem:[#allocation4 + $0x23]] }
 0x144   : > { %1131 = vrot.lane.b32.xlu0 %v1129_v25, %s1859_s9  ;;  %723 = vrot.lane.b32.xlu1 %v721_v26, %s1860_s21  ;;  %v690_v25 = vmul.f32 %v689_v23, %v2167_v13  ;;  %v835_v26 = vstv %s1520_s25  ;;  %v1158_v23 = vmul.f32 %v1157_v18, %v2167_v13  ;;  %s1474_s25 = sld [smem:[#allocation4 + $0x3f]] }
 0x148   : > { %1005 = vrot.lane.b32.xlu0 %v1003_v29, %s1860_s21  ;;  %985 = vrot.lane.b32.xlu1 %v983_v30, %s1859_s9  ;;  %v836_v29 = vmul.f32 %v835_v26, %v2167_v13  ;;  %v952_v30 = vmul.f32 %v951_v27, %v2167_v13  ;;  %v1167_v26 = vld [vmem:[#allocation8 + $0x5] ss:$8 sm:$0x3] }
 0x14c   : > { %1277 = vrot.lane.b32.xlu0 %v1275_v36, %s1859_s9  ;;  %1257 = vrot.lane.b32.xlu1 %v1255_v37, %s1858_s2  ;;  %v584_v37 = vmul.f32 %v583_v31, %v2167_v13  ;;  %v1313_v31 = vld [vmem:[#allocation8 + $0x6] ss:$8 sm:$0x3] }
 0x150   : > { %869 = vrot.lane.b32.xlu1 %v867_v41, %s1860_s21  ;;  %632 = vrot.lane.b32.xlu0 %v630_v39, %s1855_s24  ;;  %v709_v41 = vstv %s1508_s0  ;;  %s1478_s0 = sld [smem:[#allocation4 + $0x4d]] }
 0x154   : > { %1151 = vrot.lane.b32.xlu1 %v1149_v46, %s1860_s21  ;;  %652 = vrot.lane.b32.xlu0 %v650_v44, %s1856_s27 }
 0x158   : > { %1297 = vrot.lane.b32.xlu1 %v1295_v53, %s1860_s21  ;;  %914 = vrot.lane.b32.xlu0 %v912_v52, %s1855_s24  ;;  %v710_v52 = vmul.f32 %v709_v41, %v2167_v13 }
 0x15c   : > { %526 = vrot.lane.b32.xlu0 %v524_v56, %s1857_s4  ;;  %350 = vrot.lane.b32.xlu1 %v348_v58, %s1855_s24 }
 0x160   : > { %1060 = vrot.lane.b32.xlu0 %v1058_v62, %s1855_s24  ;;  %486 = vrot.lane.b32.xlu1 %v484_v63, %s1855_s24  ;;  %v972_v62 = vmul.f32 %v971_v55, %v2167_v13  ;;  %v1303_v55 = vstv %s2413_s30  ;;  %s227_s30 = scalar_lea.vmem [#allocation11], %s1469_s29 }
 0x164   : > { %798 = vrot.lane.b32.xlu0 %v796_v2, %s1856_s27  ;;  %506 = vrot.lane.b32.xlu1 %v504_v3, %s1856_s27 }
 0x168   : > { %546 = vrot.lane.b32.xlu0 %v544_v7, %s1858_s2  ;;  %778 = vrot.lane.b32.xlu1 %v776_v8, %s1855_s24  ;;  %v1244_v7 = vmul.f32 %v1243_v1, %v2167_v13 }
 0x16c   : > { %1080 = vrot.lane.b32.xlu0 %v1078_v11, %s1856_s27  ;;  %672 = vrot.lane.b32.xlu1 %v670_v12, %s1857_s4 }
 0x170   : > { %818 = vrot.lane.b32.xlu0 %v816_v16, %s1857_s4  ;;  %934 = vrot.lane.b32.xlu1 %v932_v17, %s1856_s27  ;;  %v730_v16 = vmul.f32 %v729_v10, %v2167_v13 }
 0x174   : > { %566 = vrot.lane.b32.xlu0 %v564_v20, %s1859_s9  ;;  %1206 = vrot.lane.b32.xlu1 %v1204_v21, %s1855_s24  ;;  %s2322_s24 = sld [smem:[#allocation4 + $0x57]] }
 0x178   : > { %1100 = vrot.lane.b32.xlu0 %v1098_v24, %s1857_s4  ;;  %692 = vrot.lane.b32.xlu1 %v690_v25, %s1858_s2  ;;  %v992_v24 = vmul.f32 %v991_v19, %v2167_v13  ;;  %v1263_v25 = vstv %s1562_s10  ;;  %s1866_s10 = smov 125  }
 0x17a   : > { %v855_v54 = vstv %s2322_s24  ;;  %s1473_s24 = sld [smem:[#allocation4 + $0xe]] }
 0x17b   : > { %v856_v61 = vmul.f32 %v855_v54, %v2167_v13  ;;  %v389_v54 = vstv %s2411_s26  ;;  %s1574_s26 = sshll.u32 %s1836_s15, 5  ;;  %s1869_s15 = smov [#allocation11]  }
 0x17c   : > { %838 = vrot.lane.b32.xlu0 %v836_v29, %s1858_s2  ;;  %954 = vrot.lane.b32.xlu1 %v952_v30, %s1857_s4  ;;  %v1264_v29 = vmul.f32 %v1263_v25, %v2167_v13  ;;  %v1137_v30 = vstv %s1550_s11  ;;  %s1867_s11 = smov 123  }
 0x17e   : > { %v2328_v34 = vpop.permute.xlu1 %339  ;;  %v478_v36 = vpop.permute.xlu0 %477 }
 0x17f   : > { %v479_v39 = vrot.slane %v478_v36, 1 }
 0x180   : > { %586 = vrot.lane.b32.xlu0 %v584_v37, %s1860_s21  ;;  %1226 = vrot.lane.b32.xlu1 %v1224_v38, %s1856_s27  ;;  %v1138_v37 = vmul.f32 %v1137_v30, %v2167_v13 }
 0x181   : > { %v480_v42 = vsel %vm342_vm6, %v478_v36, %v479_v39  ;;  %v368_v39 = vstv %s1474_s25  ;;  %s1868_s25 = smov 122  }
 0x182   : > { %v2340_v44 = vadd.f32 %v480_v42, %v2197_v32  ;;  %v2342_v45 = vpop.permute.xlu1 %497  ;;  %v624_v46 = vpop.permute.xlu0 %623 }
 0x183   : > { %v625_v53 = vrot.slane %v624_v46, 1 }
 0x184   : > { %1120 = vrot.lane.b32.xlu0 %v1118_v51, %s1858_s2  ;;  %712 = vrot.lane.b32.xlu1 %v710_v52, %s1859_s9  ;;  %v369_v52 = vmul.f32 %v368_v39, %v2167_v13 }
 0x185   : > { %v626_v32 = vsel %vm342_vm6, %v624_v46, %v625_v53  ;;  %v876_v53 = vmul.f32 %v875_v40, %v2167_v13 }
 0x186   : > { %v2356_v56 = vadd.f32 %v626_v32, %v2201_v35  ;;  %v770_v58 = vpop.permute.xlu1 %769  ;;  %v2358_v60 = vpop.permute.xlu0 %643 }
 0x187   : > { %v771_v63 = vrot.slane %v770_v58, 1 }
 0x188   : > { %858 = vrot.lane.b32.xlu0 %v856_v61, %s1859_s9  ;;  %974 = vrot.lane.b32.xlu1 %v972_v62, %s1858_s2  ;;  %v1304_v61 = vmul.f32 %v1303_v55, %v2167_v13  ;;  %v410_v62 = vstv %s1478_s0 }
 0x189   : > { %v772_v35 = vsel %vm342_vm6, %v770_v58, %v771_v63  ;;  %v390_v58 = vmul.f32 %v389_v54, %v2167_v13  ;;  %v358_v63 = vstv %s1473_s24 }
 0x18a   : > { %v2372_v2 = vadd.f32 %v772_v35, %v2212_v43  ;;  %v2374_v3 = vpop.permute.xlu1 %517  ;;  %v906_v4 = vpop.permute.xlu0 %905  ;;  %v411_v35 = vmul.f32 %v410_v62, %v2167_v13 }
 0x18b   : > { %v907_v8 = vrot.slane %v906_v4, 1 }
 0x18c   : > { %1014 = vrot.lane.b32.xlu0 %v1012_v6, %s1860_s21  ;;  %1246 = vrot.lane.b32.xlu1 %v1244_v7, %s1857_s4  ;;  %v431_v6 = vstv %s1480_s16  ;;  %v379_v7 = vstv %s1475_s28  ;;  %s1340_s16 = scalar_lea.sflag [#allocation6], %s2081_s7 }
 0x18d   : > { %v908_v43 = vsel %vm342_vm6, %v906_v4, %v907_v8  ;;  %v359_v4 = vmul.f32 %v358_v63, %v2107_v59  ;;  %v432_v10 = vmul.f32 %v431_v6, %v2167_v13 }
 0x18e   : > { %v2384_v11 = vadd.f32 %v908_v43, %v2219_v47  ;;  %v1052_v12 = vpop.permute.xlu1 %1051  ;;  %v2386_v14 = vpop.permute.xlu0 %789  ;;  %v380_v43 = vmul.f32 %v379_v7, %v2107_v59  ;;  %v325_v7 = vld [vmem:[#allocation2] sm:$0x3] }
 0x18f   : > { %v1053_v17 = vrot.slane %v1052_v12, 1 }
 0x190   : > { %1286 = vrot.lane.b32.xlu0 %v1284_v15, %s1859_s9  ;;  %732 = vrot.lane.b32.xlu1 %v730_v16, %s1860_s21  ;;  %v400_v15 = vstv %s1477_s8 }
 0x191   : > { %v1054_v20 = vsel %vm342_vm6, %v1052_v12, %v1053_v17  ;;  %v452_v12 = vstv %s1482_s5  ;;  %v401_v19 = vmul.f32 %v400_v15, %v2107_v59  ;;  %s1758_s5 = sshll.u32 %s1869_s15, 4  ;;  %s1759_s5 = int_to_ptr.vmem [resolvable:$false] %s1758_s5 }
 0x192   : > { %v2396_v47 = vadd.f32 %v1054_v20, %v2221_v50  ;;  %v2398_v21 = vpop.permute.xlu1 %663  ;;  %v2400_v22 = vpop.permute.xlu0 %537  ;;  %v453_v18 = vmul.f32 %v452_v12, %v2167_v13  ;;  %v421_v20 = vstv %s1479_s20  ;;  %s1760_s8 = scalar_lea.vmem %s1759_s5, 64 }
 0x193   : > { %v422_v25 = vmul.f32 %v421_v20, %v2107_v59  ;;  %v665_v63 = vrot.slane %v2398_v21, 1 }
 0x194   : > { %1160 = vrot.lane.b32.xlu0 %v1158_v23, %s1860_s21  ;;  %994 = vrot.lane.b32.xlu1 %v992_v24, %s1859_s9 }
 0x196   : > { %v2406_v27 = vpop.permute.xlu1 %925  ;;  %v2408_v50 = vpop.permute.xlu0 %1071 }
 0x198   : > { %1169 = vrot.lane.b32.xlu0 %v1167_v26, %s1861_s6  ;;  %1266 = vrot.lane.b32.xlu1 %v1264_v29, %s1858_s2  ;;  %v442_v26 = vstv %s1481_s22  ;;  %s1354_s6 = sshll.u32 %s227_s30, 4  ;;  %s2661_s6 = int_to_ptr.vmem [resolvable:$true] %s1354_s6 }
 0x199   : > { %v443_v13 = vmul.f32 %v442_v26, %v2107_v59  ;;  %s1754_s28 = scalar_lea.vmem %s2661_s6, 32  ;;  %p1761_p9 = scmp.lt.s32.totalorder %s2661_s6, %s1759_s5 }
 0x19a   : > { %v1198_v33 = vpop.permute.xlu1 %1197  ;;  %v2416_v36 = vpop.permute.xlu0 %809  ;;  %p1755_p1 = scmp.ne.s32.totalorder %s2661_s6, %s1754_s28  ;;  %p1762_p0 = scmp.lt.s32.totalorder %s1760_s8, %s1754_s28 }
 0x19b   : > { %v1199_v38 = vrot.slane %v1198_v33, 1 }
 0x19c   : > { %1315 = vrot.lane.b32.xlu0 %v1313_v31, %s1862_s1  ;;  %1140 = vrot.lane.b32.xlu1 %v1138_v37, %s1859_s9  ;;  %s2659_s1 = scalar_lea.hbm %s2711_s3, %s1574_s26  ;;  %p1756_p4 = pnand %p1755_p1, %p2024_p8 }
 0x19d   : > { %v1200_v41 = vsel %vm342_vm6, %v1198_v33, %v1199_v38  ;;  %p1763_p11 = por %p1762_p0, %p1761_p9 }
 0x19e   : > { %v2422_v42 = vadd.f32 %v1200_v41, %v2231_v57  ;;  %v2424_v46 = vpop.permute.xlu1 %683  ;;  %v2426_v51 = vpop.permute.xlu0 %557  ;;  %v645_v41 = vrot.slane %v2358_v60, 1  ;;  %p1757_p6 = pneg %p1756_p4 }
 0x1a0   : > { %371 = vrot.lane.b32.xlu0 %v369_v52, %s1856_s27  ;;  %878 = vrot.lane.b32.xlu1 %v876_v53, %s1860_s21  ;;  %v646_v62 = vsel %vm364_vm7, %v2358_v60, %v645_v41  ;;  %v927_v60 = vrot.slane %v2406_v27, 1  ;;  %p1764_p5 = pnand %p1763_p11, %p1757_p6 }
 0x1a2   : > { %v2434_v32 = vpop.permute.xlu1 %945  ;;  %v2436_v57 = vpop.permute.xlu0 %1091 }
 0x1a4   : > { %392 = vrot.lane.b32.xlu0 %v390_v58, %s1857_s4  ;;  %1306 = vrot.lane.b32.xlu1 %v1304_v61, %s1860_s21  ;;  %v329_v61 = vld [vmem:[#allocation3] sm:$0x3] }
 0x1a6   : > { %v2442_v0 = vpop.permute.xlu1 %1217  ;;  %v2444_v1 = vpop.permute.xlu0 %829 }
 0x1a8   : > { %413 = vrot.lane.b32.xlu0 %v411_v35, %s1858_s2  ;;  %361 = vrot.lane.b32.xlu1 %v359_v4, %s1856_s27  ;;  %s1470_s27 = sld [smem:[#allocation4 + $0x31]] }
 0x1aa   : > { %v2450_v8 = vpop.permute.xlu1 %703  ;;  %v2452_v9 = vpop.permute.xlu0 %577 }
 0x1ac   : > { %434 = vrot.lane.b32.xlu0 %v432_v10, %s1859_s9  ;;  %382 = vrot.lane.b32.xlu1 %v380_v43, %s1857_s4  ;;  %s323_s4 = sld [smem:[#allocation4]]  ;;  %v341_v10 = vrot.slane %v2328_v34, 1 }
 0x1ae   : > { %v2458_v16 = vpop.permute.xlu1 %965  ;;  %v2460_v17 = vpop.permute.xlu0 %1111  ;;  %v330_v58 = vstv %s1470_s27 }
 0x1af   : > { %v331_v12 = vmul.f32 %v330_v58, %v329_v61 }
 0x1b0   : > { %455 = vrot.lane.b32.xlu0 %v453_v18, %s1860_s21  ;;  %403 = vrot.lane.b32.xlu1 %v401_v19, %s1858_s2  ;;  %v666_v19 = vsel %vm385_vm8, %v2398_v21, %v665_v63  ;;  %s1863_s2 = smov 127  }
 0x1b2   : > { %v2466_v23 = vpop.permute.xlu1 %1237  ;;  %v2468_v24 = vpop.permute.xlu0 %849  ;;  %v326_v6 = vstv %s323_s4 }
 0x1b4   : > { %424 = vrot.lane.b32.xlu1 %v422_v25, %s1859_s9  ;;  %v327_v25 = vmul.f32 %v326_v6, %v325_v7  ;;  %v1073_v6 = vrot.slane %v2408_v50, 1  ;;  %s1864_s9 = smov 126  }
 0x1b6   : > { %v2472_v29 = vpop.permute.xlu1 %723  ;;  %v2474_v30 = vpop.permute.xlu0 %1131  ;;  %v332_v41 = vadd.f32 %v331_v12, %v327_v25 }
 0x1b8   : > { %445 = vrot.lane.b32.xlu1 %v443_v13, %s1860_s21  ;;  %v343_v13 = vsel %vm342_vm6, %v2328_v34, %v341_v10  ;;  %s1865_s21 = smov 124  }
 0x1b9   : > { %v345_v58 = vadd.f32 %v343_v13, %v332_v41  ;;  %v791_v13 = vrot.slane %v2386_v14, 1 }
 0x1ba   : > { %v2478_v31 = vpop.permute.xlu1 %985  ;;  %v2480_v33 = vpop.permute.xlu0 %1005 }
 0x1be   : > { %v2482_v37 = vpop.permute.xlu1 %1257  ;;  %v2484_v38 = vpop.permute.xlu0 %1277 }
 0x1c2   : > { %v2486_v39 = vpop.permute.xlu1 %869  ;;  %v633_v40 = vpop.permute.xlu0 %632 }
 0x1c3   : > { %v634_v52 = vrot.slane %v633_v40, 1 }
 0x1c5   : > { %v635_v59 = vsel %vm342_vm6, %v633_v40, %v634_v52 }
 0x1c6   : > { %v637_v53 = vadd.f32 %v635_v59, %v2356_v56  ;;  %v2491_v54 = vpop.permute.xlu1 %1151  ;;  %v653_v55 = vpop.permute.xlu0 %652 }
 0x1c7   : > { %v654_v35 = vrot.slane %v653_v55, 1 }
 0x1c8   : > { %v648_v4 = vadd.f32 %v646_v62, %v637_v53 }
 0x1c9   : > { %v655_v43 = vsel %vm364_vm7, %v653_v55, %v654_v35  ;;  %v928_v55 = vsel %vm364_vm7, %v2406_v27, %v927_v60  ;;  %v519_v60 = vrot.slane %v2374_v3, 1 }
 0x1ca   : > { %v657_v56 = vadd.f32 %v655_v43, %v648_v4  ;;  %v2498_v15 = vpop.permute.xlu1 %1297  ;;  %v915_v18 = vpop.permute.xlu0 %914  ;;  %v499_v4 = vrot.slane %v2342_v45, 1 }
 0x1cb   : > { %v916_v20 = vrot.slane %v915_v18, 1 }
 0x1cc   : > { %v2503_v26 = vadd.f32 %v666_v19, %v657_v56  ;;  %v500_v19 = vsel %vm364_vm7, %v2342_v45, %v499_v4 }
 0x1cd   : > { %v917_v40 = vsel %vm342_vm6, %v915_v18, %v916_v20  ;;  %v1074_v20 = vsel %vm364_vm7, %v2408_v50, %v1073_v6  ;;  %v685_v50 = vrot.slane %v2424_v46, 1 }
 0x1ce   : > { %v919_v52 = vadd.f32 %v917_v40, %v2384_v11  ;;  %v351_v59 = vpop.permute.xlu1 %350  ;;  %v527_v53 = vpop.permute.xlu0 %526 }
 0x1cf   : > { %v352_v21 = vrot.slane %v351_v59, 1 }
 0x1d0   : > { %v2511_v61 = vadd.f32 %v928_v55, %v919_v52  ;;  %v528_v52 = vrot.slane %v527_v53, 1 }
 0x1d1   : > { %v353_v62 = vsel %vm342_vm6, %v351_v59, %v352_v21  ;;  %v811_v59 = vrot.slane %v2416_v36, 1 }
 0x1d2   : > { %v2514_v63 = vadd.f32 %v353_v62, %v345_v58  ;;  %v487_v35 = vpop.permute.xlu1 %486  ;;  %v1061_v34 = vpop.permute.xlu0 %1060  ;;  %v520_v58 = vsel %vm385_vm8, %v2374_v3, %v519_v60  ;;  %v529_v6 = vsel %vm385_vm8, %v527_v53, %v528_v52  ;;  %v1093_v53 = vrot.slane %v2436_v57, 1 }
 0x1d3   : > { %v488_v11 = vrot.slane %v487_v35, 1  ;;  %v1062_v7 = vrot.slane %v1061_v34, 1 }
 0x1d5   : > { %v489_v10 = vsel %vm342_vm6, %v487_v35, %v488_v11  ;;  %v1063_v27 = vsel %vm342_vm6, %v1061_v34, %v1062_v7  ;;  %v792_v35 = vsel %vm364_vm7, %v2386_v14, %v791_v13  ;;  %v559_v34 = vrot.slane %v2426_v51, 1 }
 0x1d6   : > { %v491_v43 = vadd.f32 %v489_v10, %v2340_v44  ;;  %v1065_v12 = vadd.f32 %v1063_v27, %v2396_v47  ;;  %v507_v56 = vpop.permute.xlu1 %506  ;;  %v799_v18 = vpop.permute.xlu0 %798  ;;  %v539_v47 = vrot.slane %v2400_v22, 1  ;;  %v812_v27 = vsel %vm385_vm8, %v2416_v36, %v811_v59 }
 0x1d7   : > { %v508_v25 = vrot.slane %v507_v56, 1  ;;  %v800_v11 = vrot.slane %v799_v18, 1 }
 0x1d8   : > { %v502_v40 = vadd.f32 %v500_v19, %v491_v43  ;;  %v1076_v41 = vadd.f32 %v1074_v20, %v1065_v12  ;;  %v540_v3 = vsel %vm406_vm9, %v2400_v22, %v539_v47  ;;  %v686_v19 = vsel %vm406_vm9, %v2424_v46, %v685_v50 }
 0x1d9   : > { %v509_v44 = vsel %vm364_vm7, %v507_v56, %v508_v25  ;;  %v560_v25 = vsel %vm427_vm10, %v2426_v51, %v559_v34  ;;  %v947_v22 = vrot.slane %v2434_v32, 1  ;;  %v801_v36 = vsel %vm364_vm7, %v799_v18, %v800_v11 }
 0x1da   : > { %v511_v55 = vadd.f32 %v509_v44, %v502_v40  ;;  %v779_v21 = vpop.permute.xlu1 %778  ;;  %v547_v45 = vpop.permute.xlu0 %546  ;;  %v1094_v51 = vsel %vm385_vm8, %v2436_v57, %v1093_v53  ;;  %v831_v50 = vrot.slane %v2444_v1, 1 }
 0x1db   : > { %v780_v62 = vrot.slane %v779_v21, 1  ;;  %v548_v10 = vrot.slane %v547_v45, 1 }
 0x1dc   : > { %v522_v4 = vadd.f32 %v520_v58, %v511_v55 }
 0x1dd   : > { %v781_v7 = vsel %vm342_vm6, %v779_v21, %v780_v62 }
 0x1de   : > { %v783_v43 = vadd.f32 %v781_v7, %v2372_v2  ;;  %v531_v12 = vadd.f32 %v529_v6, %v522_v4  ;;  %v673_v14 = vpop.permute.xlu1 %672  ;;  %v1081_v56 = vpop.permute.xlu0 %1080  ;;  %v549_v2 = vsel %vm406_vm9, %v547_v45, %v548_v10 }
 0x1df   : > { %v674_v60 = vrot.slane %v673_v14, 1  ;;  %v1082_v20 = vrot.slane %v1081_v56, 1 }
 0x1e0   : > { %v794_v13 = vadd.f32 %v792_v35, %v783_v43  ;;  %v542_v40 = vadd.f32 %v540_v3, %v531_v12  ;;  %v579_v43 = vrot.slane %v2452_v9, 1 }
 0x1e1   : > { %v675_v52 = vsel %vm385_vm8, %v673_v14, %v674_v60  ;;  %v1083_v44 = vsel %vm364_vm7, %v1081_v56, %v1082_v20  ;;  %v705_v60 = vrot.slane %v2450_v8, 1 }
 0x1e2   : > { %v551_v46 = vadd.f32 %v549_v2, %v542_v40  ;;  %v677_v47 = vadd.f32 %v675_v52, %v2503_v26  ;;  %v1085_v59 = vadd.f32 %v1083_v44, %v1076_v41  ;;  %v935_v55 = vpop.permute.xlu1 %934  ;;  %v803_v21 = vadd.f32 %v801_v36, %v794_v13  ;;  %v819_v58 = vpop.permute.xlu0 %818 }
 0x1e3   : > { %v936_v62 = vrot.slane %v935_v55, 1  ;;  %v820_v18 = vrot.slane %v819_v58, 1  ;;  %v948_v26 = vsel %vm385_vm8, %v2434_v32, %v947_v22  ;;  %v1219_v41 = vrot.slane %v2442_v0, 1 }
 0x1e4   : > { %v814_v35 = vadd.f32 %v812_v27, %v803_v21  ;;  %v562_v45 = vadd.f32 %v560_v25, %v551_v46  ;;  %v688_v34 = vadd.f32 %v686_v19, %v677_v47  ;;  %v1096_v4 = vadd.f32 %v1094_v51, %v1085_v59 }
 0x1e5   : > { %v937_v6 = vsel %vm364_vm7, %v935_v55, %v936_v62  ;;  %v821_v11 = vsel %vm385_vm8, %v819_v58, %v820_v18  ;;  %v832_v27 = vsel %vm406_vm9, %v2444_v1, %v831_v50  ;;  %v580_v13 = vsel %vm448_vm11, %v2452_v9, %v579_v43 }
 0x1e6   : > { %v939_v7 = vadd.f32 %v937_v6, %v2511_v61  ;;  %v823_v57 = vadd.f32 %v821_v11, %v814_v35  ;;  %v1207_v10 = vpop.permute.xlu1 %1206  ;;  %v567_v3 = vpop.permute.xlu0 %566  ;;  %v1220_v61 = vsel %vm364_vm7, %v2442_v0, %v1219_v41  ;;  %v1113_v40 = vrot.slane %v2460_v17, 1 }
 0x1e7   : > { %v1208_v12 = vrot.slane %v1207_v10, 1  ;;  %v568_v14 = vrot.slane %v567_v3, 1  ;;  %v706_v47 = vsel %vm427_vm10, %v2450_v8, %v705_v60  ;;  %v851_v51 = vrot.slane %v2468_v24, 1 }
 0x1e8   : > { %v950_v56 = vadd.f32 %v948_v26, %v939_v7  ;;  %v834_v19 = vadd.f32 %v832_v27, %v823_v57  ;;  %v1114_v9 = vsel %vm406_vm9, %v2460_v17, %v1113_v40  ;;  %v597_v8 = vrot.slane %v2091_v48, 7 }
 0x1e9   : > { %v1209_v53 = vsel %vm342_vm6, %v1207_v10, %v1208_v12  ;;  %v569_v32 = vsel %vm427_vm10, %v567_v3, %v568_v14  ;;  %v1239_v17 = vrot.slane %v2466_v23, 1  ;;  %v852_v7 = vsel %vm427_vm10, %v2468_v24, %v851_v51 }
 0x1ea   : > { %v1211_v20 = vadd.f32 %v1209_v53, %v2422_v42  ;;  %v571_v25 = vadd.f32 %v569_v32, %v562_v45  ;;  %v693_v1 = vpop.permute.xlu1 %692  ;;  %v1101_v22 = vpop.permute.xlu0 %1100  ;;  %v967_v42 = vrot.slane %v2458_v16, 1  ;;  %v1133_v14 = vrot.slane %v2474_v30, 1 }
 0x1eb   : > { %v694_v36 = vrot.slane %v693_v1, 1  ;;  %v1102_v2 = vrot.slane %v1101_v22, 1  ;;  %v1240_v24 = vsel %vm385_vm8, %v2466_v23, %v1239_v17  ;;  %vm1326_vm6 = vcmask 998400  }
 0x1ec   : > { %v1222_v52 = vadd.f32 %v1220_v61, %v1211_v20  ;;  %v582_v44 = vadd.f32 %v580_v13, %v571_v25  ;;  %v599_v61 = vsel %vm598_vm12, %v597_v8, %v2091_v48 }
 0x1ed   : > { %v695_v46 = vsel %vm406_vm9, %v693_v1, %v694_v36  ;;  %v1103_v0 = vsel %vm385_vm8, %v1101_v22, %v1102_v2  ;;  %v1134_v36 = vsel %vm427_vm10, %v2474_v30, %v1133_v14 }
 0x1ee   : > { %v697_v59 = vadd.f32 %v695_v46, %v688_v34  ;;  %v1105_v55 = vadd.f32 %v1103_v0, %v1096_v4  ;;  %v955_v21 = vpop.permute.xlu1 %954  ;;  %v839_v58 = vpop.permute.xlu0 %838  ;;  %v968_v34 = vsel %vm406_vm9, %v2458_v16, %v967_v42  ;;  %v725_v16 = vrot.slane %v2472_v29, 1 }
 0x1ef   : > { %v956_v50 = vrot.slane %v955_v21, 1  ;;  %v840_v62 = vrot.slane %v839_v58, 1  ;;  %v871_v46 = vrot.slane %v2486_v39, 1 }
 0x1f0   : > { %v708_v18 = vadd.f32 %v706_v47, %v697_v59  ;;  %v1116_v35 = vadd.f32 %v1114_v9, %v1105_v55  ;;  %v726_v40 = vsel %vm448_vm11, %v2472_v29, %v725_v16  ;;  %v1025_v16 = vrot.slane %v2318_v28, 7 }
 0x1f1   : > { %v957_v45 = vsel %vm385_vm8, %v955_v21, %v956_v50  ;;  %v841_v6 = vsel %vm406_vm9, %v839_v58, %v840_v62  ;;  %v1259_v50 = vrot.slane %v2482_v37, 1  ;;  %v872_v62 = vsel %vm448_vm11, %v2486_v39, %v871_v46 }
 0x1f2   : > { %v959_v4 = vadd.f32 %v957_v45, %v950_v56  ;;  %v843_v11 = vadd.f32 %v841_v6, %v834_v19  ;;  %v1227_v26 = vpop.permute.xlu1 %1226  ;;  %v587_v41 = vpop.permute.xlu0 %586 }
 0x1f3   : > { %v1228_v57 = vrot.slane %v1227_v26, 1  ;;  %v588_v10 = vrot.slane %v587_v41, 1 }
 0x1f4   : > { %v970_v3 = vadd.f32 %v968_v34, %v959_v4  ;;  %v854_v27 = vadd.f32 %v852_v7, %v843_v11  ;;  %v743_v4 = vrot.slane %v2093_v49, 7  ;;  %v1260_v11 = vsel %vm406_vm9, %v2482_v37, %v1259_v50 }
 0x1f5   : > { %v1229_v43 = vsel %vm364_vm7, %v1227_v26, %v1228_v57  ;;  %v589_v12 = vsel %vm448_vm11, %v587_v41, %v588_v10  ;;  %v1007_v10 = vrot.slane %v2480_v33, 1 }
 0x1f6   : > { %v1231_v56 = vadd.f32 %v1229_v43, %v1222_v52  ;;  %v591_v19 = vadd.f32 %v589_v12, %v582_v44  ;;  %v713_v53 = vpop.permute.xlu1 %712  ;;  %v1121_v32 = vpop.permute.xlu0 %1120  ;;  %v987_v44 = vrot.slane %v2478_v31, 1  ;;  %v745_v57 = vsel %vm744_vm13, %v743_v4, %v2093_v49 }
 0x1f7   : > { %v714_v60 = vrot.slane %v713_v53, 1  ;;  %v1122_v20 = vrot.slane %v1121_v32, 1  ;;  %v1279_v49 = vrot.slane %v2484_v38, 1 }
 0x1f8   : > { %v601_v25 = vmul.f32 %v599_v61, %v591_v19  ;;  %v1242_v1 = vadd.f32 %v1240_v24, %v1231_v56  ;;  %v988_v51 = vsel %vm427_vm10, %v2478_v31, %v987_v44  ;;  %v1008_v19 = vsel %vm448_vm11, %v2480_v33, %v1007_v10 }
 0x1f9   : > { %v715_v22 = vsel %vm427_vm10, %v713_v53, %v714_v60  ;;  %v1123_v13 = vsel %vm406_vm9, %v1121_v32, %v1122_v20  ;;  %v1027_v20 = vsel %vm1026_vm14, %v1025_v16, %v2318_v28  ;;  %v1299_v33 = vrot.slane %v2498_v15, 1 }
 0x1fa   : > { %v717_v2 = vadd.f32 %v715_v22, %v708_v18  ;;  %v1125_v52 = vadd.f32 %v1123_v13, %v1116_v35  ;;  %v975_v48 = vpop.permute.xlu1 %974  ;;  %603 = vrot.lane.b32.xlu1 %v601_v25, %s1863_s2  ;;  %v859_v23 = vpop.permute.xlu0 %858  ;;  %v1280_v13 = vsel %vm427_vm10, %v2484_v38, %v1279_v49 }
 0x1fb   : > { %v976_v0 = vrot.slane %v975_v48, 1  ;;  %v860_v47 = vrot.slane %v859_v23, 1 }
 0x1fc   : > { %v728_v42 = vadd.f32 %v726_v40, %v717_v2  ;;  %v1136_v59 = vadd.f32 %v1134_v36, %v1125_v52  ;;  %v1153_v40 = vrot.slane %v2491_v54, 1 }
 0x1fd   : > { %v977_v55 = vsel %vm406_vm9, %v975_v48, %v976_v0  ;;  %v861_v29 = vsel %vm427_vm10, %v859_v23, %v860_v47 }
 0x1fe   : > { %v979_v21 = vadd.f32 %v977_v55, %v970_v3  ;;  %v863_v30 = vadd.f32 %v861_v29, %v854_v27  ;;  %v1247_v58 = vpop.permute.xlu1 %1246  ;;  %v1015_v9 = vpop.permute.xlu0 %1014  ;;  %v1154_v38 = vsel %vm448_vm11, %v2491_v54, %v1153_v40 }
 0x1ff   : > { %v1248_v18 = vrot.slane %v1247_v58, 1  ;;  %v1016_v43 = vrot.slane %v1015_v9, 1 }
 0x200   : > { %v990_v35 = vadd.f32 %v988_v51, %v979_v21  ;;  %v874_v45 = vadd.f32 %v872_v62, %v863_v30 }
 0x201   : > { %v1249_v6 = vsel %vm385_vm8, %v1247_v58, %v1248_v18  ;;  %v1017_v61 = vsel %vm448_vm11, %v1015_v9, %v1016_v43 }
 0x202   : > { %v1251_v8 = vadd.f32 %v1249_v6, %v1242_v1  ;;  %v733_v34 = vpop.permute.xlu1 %732  ;;  %v1287_v31 = vpop.permute.xlu0 %1286 }
 0x203   : > { %v734_v26 = vrot.slane %v733_v34, 1  ;;  %v1288_v24 = vrot.slane %v1287_v31, 1 }
 0x204   : > { %v1262_v41 = vadd.f32 %v1260_v11, %v1251_v8 }
 0x205   : > { %v735_v17 = vsel %vm448_vm11, %v733_v34, %v734_v26  ;;  %v1289_v23 = vsel %vm427_vm10, %v1287_v31, %v1288_v24 }
 0x206   : > { %v737_v7 = vadd.f32 %v735_v17, %v728_v42  ;;  %v995_v39 = vpop.permute.xlu1 %994  ;;  %v1161_v14 = vpop.permute.xlu0 %1160  ;;  %v1300_v42 = vsel %vm448_vm11, %v2498_v15, %v1299_v33 }
 0x207   : > { %v996_v3 = vrot.slane %v995_v39, 1  ;;  %v1162_v44 = vrot.slane %v1161_v14, 1 }
 0x208   : > { %v747_v27 = vmul.f32 %v745_v57, %v737_v7 }
 0x209   : > { %v997_v12 = vsel %vm427_vm10, %v995_v39, %v996_v3  ;;  %v1163_v30 = vsel %vm448_vm11, %v1161_v14, %v1162_v44 }
 0x20a   : > { %v999_v37 = vadd.f32 %v997_v12, %v990_v35  ;;  %v1267_v56 = vpop.permute.xlu1 %1266  ;;  %749 = vrot.lane.b32.xlu0 %v747_v27, %s1864_s9  ;;  %v1170_v52 = vpop.permute.xlu0 %1169 }
 0x20b   : > { %v1268_v53 = vrot.slane %v1267_v56, 1  ;;  %v1171_v58 = vrot.slane %v1170_v52, 7 }
 0x20c   : > { %v1010_v32 = vadd.f32 %v1008_v19, %v999_v37 }
 0x20d   : > { %v1269_v60 = vsel %vm406_vm9, %v1267_v56, %v1268_v53  ;;  %v1173_v54 = vsel %vm1172_vm15, %v1171_v58, %v1170_v52 }
 0x20e   : > { %v1271_v25 = vadd.f32 %v1269_v60, %v1262_v41  ;;  %v1141_v1 = vpop.permute.xlu1 %1140  ;;  %v1019_v22 = vadd.f32 %v1017_v61, %v1010_v32 }
 0x20f   : > { %v1142_v36 = vrot.slane %v1141_v1, 1 }
 0x210   : > { %v1282_v2 = vadd.f32 %v1280_v13, %v1271_v25  ;;  %v1029_v48 = vmul.f32 %v1027_v20, %v1019_v22 }
 0x211   : > { %v1143_v46 = vsel %vm427_vm10, %v1141_v1, %v1142_v36 }
 0x212   : > { %v1145_v28 = vadd.f32 %v1143_v46, %v1136_v59  ;;  %v879_v0 = vpop.permute.xlu1 %878  ;;  %1031 = vrot.lane.b32.xlu0 %v1029_v48, %s1865_s21  ;;  %v1291_v47 = vadd.f32 %v1289_v23, %v1282_v2  ;;  %v1316_v59 = vpop.permute.xlu0 %1315 }
 0x213   : > { %v880_v55 = vrot.slane %v879_v0, 1  ;;  %v1317_v18 = vrot.slane %v1316_v59, 7 }
 0x214   : > { %v1156_v29 = vadd.f32 %v1154_v38, %v1145_v28  ;;  %v1302_v21 = vadd.f32 %v1300_v42, %v1291_v47  ;;  %v461_v38 = vld [vmem:[#allocation8] ss:$8 sm:$0x3] }
 0x215   : > { %v881_v9 = vsel %vm448_vm11, %v879_v0, %v880_v55  ;;  %v1319_v34 = vsel %vm1318_vm0, %v1317_v18, %v1316_v59 }
 0x216   : > { %v883_v51 = vadd.f32 %v881_v9, %v874_v45  ;;  %v1307_v50 = vpop.permute.xlu1 %1306  ;;  %v1165_v62 = vadd.f32 %v1163_v30, %v1156_v29  ;;  %v372_v26 = vpop.permute.xlu0 %371 }
 0x217   : > { %v1308_v35 = vrot.slane %v1307_v50, 1  ;;  %v373_v17 = vrot.slane %v372_v26, 1 }
 0x218   : > { %885 = vrot.lane.b32.xlu1 %v883_v51, %s1866_s10  ;;  %v1175_v8 = vmul.f32 %v1173_v54, %v1165_v62 }
 0x219   : > { %v1309_v15 = vsel %vm448_vm11, %v1307_v50, %v1308_v35  ;;  %v374_v57 = vsel %vm364_vm7, %v372_v26, %v373_v17 }
 0x21a   : > { %v1311_v6 = vadd.f32 %v1309_v15, %v1302_v21  ;;  %v362_v11 = vpop.permute.xlu1 %361  ;;  %v393_v10 = vpop.permute.xlu0 %392 }
 0x21b   : > { %v363_v45 = vrot.slane %v362_v11, 1  ;;  %v394_v12 = vrot.slane %v393_v10, 1 }
 0x21c   : > { %1177 = vrot.lane.b32.xlu1 %v1175_v8, %s1867_s11  ;;  %v1321_v4 = vmul.f32 %v1319_v34, %v1311_v6 }
 0x21d   : > { %v365_v31 = vsel %vm364_vm7, %v362_v11, %v363_v45  ;;  %v395_v14 = vsel %vm385_vm8, %v393_v10, %v394_v12  ;;  %vm1336_vm7 = vcmp.lt.s32.totalorder %v267_v5, 256 }
 0x21e   : > { %1323 = vrot.lane.b32.xlu0 %v1321_v4, %s1868_s25  ;;  %v383_v41 = vpop.permute.xlu1 %382  ;;  %v367_v7 = vadd.f32 %v365_v31, %v2514_v63  ;;  %v414_v56 = vpop.permute.xlu0 %413 }
 0x21f   : > { %v384_v39 = vrot.slane %v383_v41, 1  ;;  %v415_v32 = vrot.slane %v414_v56, 1 }
 0x220   : > { %v376_v3 = vadd.f32 %v374_v57, %v367_v7 }
 0x221   : > { %v386_v27 = vsel %vm385_vm8, %v383_v41, %v384_v39  ;;  %v416_v24 = vsel %vm406_vm9, %v414_v56, %v415_v32 }
 0x222   : > { %v404_v43 = vpop.permute.xlu1 %403  ;;  %v388_v16 = vadd.f32 %v386_v27, %v376_v3  ;;  %v435_v60 = vpop.permute.xlu0 %434 }
 0x223   : > { %v405_v37 = vrot.slane %v404_v43, 1  ;;  %v436_v22 = vrot.slane %v435_v60, 1 }
 0x224   : > { %v397_v19 = vadd.f32 %v395_v14, %v388_v16 }
 0x225   : > { %v407_v49 = vsel %vm406_vm9, %v404_v43, %v405_v37  ;;  %v437_v33 = vsel %vm427_vm10, %v435_v60, %v436_v22 }
 0x226   : > { %v425_v53 = vpop.permute.xlu1 %424  ;;  %v409_v63 = vadd.f32 %v407_v49, %v397_v19  ;;  %v456_v36 = vpop.permute.xlu0 %455 }
 0x227   : > { %v426_v61 = vrot.slane %v425_v53, 1  ;;  %v457_v48 = vrot.slane %v456_v36, 1 }
 0x228   : > { %v418_v20 = vadd.f32 %v416_v24, %v409_v63 }
 0x229   : > { %v428_v25 = vsel %vm427_vm10, %v425_v53, %v426_v61  ;;  %v458_v28 = vsel %vm448_vm11, %v456_v36, %v457_v48 }
 0x22a   : > { %v446_v1 = vpop.permute.xlu1 %445  ;;  %v430_v13 = vadd.f32 %v428_v25, %v418_v20 }
 0x22b   : > { %v447_v40 = vrot.slane %v446_v1, 1 }
 0x22c   : > { %v439_v2 = vadd.f32 %v437_v33, %v430_v13 }
 0x22d   : > { %v449_v52 = vsel %vm448_vm11, %v446_v1, %v447_v40 }
 0x22e   : > { %v451_v23 = vadd.f32 %v449_v52, %v439_v2 }
 0x230   : > { %v460_v47 = vadd.f32 %v458_v28, %v451_v23 }
 0x232   : > { %v462_v29 = vmul.f32 %v461_v38, %v460_v47 }
 0x26c   : > { %v604_v44 = vpop.permute.xlu1 %603 }
 0x26d   : > { %v605_v0 = vrot.slane %v604_v44, 1 }
 0x26f   : > { %v607_v55 = vsel %vm606_vm1, %v604_v44, %v605_v0 }
 0x270   : > { %v609_v58 = vadd.f32 %v607_v55, %v462_v29 }
 0x27c   : > { %v750_v46 = vpop.permute.xlu0 %749 }
 0x27d   : > { %v751_v42 = vrot.slane %v750_v46, 1 }
 0x27f   : > { %v753_v30 = vsel %vm752_vm2, %v750_v46, %v751_v42 }
 0x280   : > { %v755_v50 = vadd.f32 %v753_v30, %v609_v58 }
 0x284   : > { %v1032_v21 = vpop.permute.xlu0 %1031 }
 0x285   : > { %v1033_v59 = vrot.slane %v1032_v21, 1 }
 0x287   : > { %v1035_v54 = vsel %vm1034_vm4, %v1032_v21, %v1033_v59 }
 0x28a   : > { %v886_v9 = vpop.permute.xlu1 %885 }
 0x28b   : > { %v887_v51 = vrot.slane %v886_v9, 1 }
 0x28d   : > { %v889_v62 = vsel %vm888_vm3, %v886_v9, %v887_v51 }
 0x28e   : > { %v891_v18 = vadd.f32 %v889_v62, %v755_v50  ;;  %v1178_v35 = vpop.permute.xlu1 %1177 }
 0x28f   : > { %v1179_v15 = vrot.slane %v1178_v35, 1 }
 0x290   : > { %v1037_v6 = vadd.f32 %v1035_v54, %v891_v18  ;;  %v1324_v8 = vpop.permute.xlu0 %1323 }
 0x291   : > { %v1181_v34 = vsel %vm1180_vm5, %v1178_v35, %v1179_v15  ;;  %v1325_v4 = vrot.slane %v1324_v8, 1 }
 0x292   : > { %v1183_v11 = vadd.f32 %v1181_v34, %v1037_v6 }
 0x293   : > { %v1327_v45 = vsel %vm1326_vm6, %v1324_v8, %v1325_v4 }
 0x294   : > { %v1329_v26 = vadd.f32 %v1327_v45, %v1183_v11 }
 0x296   : > { %v1567_v31 = vmul.f32 -1.442695, %v1329_v26 }
 0x298   : > { %1679 = vpow2.f32 %v1567_v31 }
 0x2a2   : > { %v1680_v41 = vpop.eup %1679 }
 0x2a3   : > { %v1333_v17 = vadd.f32 1.0, %v1680_v41 }
 0x2a5   : > { %1681 = vrcp.f32 %v1333_v17 }
 0x2af   : > { %v1682_v7 = vpop.eup %1681 }
 0x2b0   : > { %1338 = vst.msk [vmem:[%s227_s30] sm:$0x3] %vm1336_vm7, %v1682_v7 }
 0x2b1   : > { %1767 = shalt.err (!%p1764_p5)
}
 0x2b2   : > { %s1768_s7 = scalar_lea.hbm %s2659_s1, 32  ;;  %s1772_s27 = scalar_lea.hbm %s2711_s3, 64 }
 0x2b3   : > { %p1769_p10 = scmp.ne.s32.totalorder %s2659_s1, %s1768_s7  ;;  %p1773_p7 = scmp.lt.u32.totalorder %s2659_s1, %s2711_s3 }
 0x2b4   : > { %p1774_p12 = scmp.lt.u32.totalorder %s1772_s27, %s1768_s7  ;;  %p1776_p1 = scmp.lt.u32.totalorder %s1768_s7, %s2659_s1 }
 0x2b5   : > { %p1770_p13 = pnand %p1769_p10, %p2024_p8 }
 0x2b6   : > { %p1775_p2 = por %p1774_p12, %p1773_p7 }
 0x2b7   : > { %p1771_p3 = pneg %p1770_p13 }
 0x2b8   : > { %p1777_p4 = por %p1776_p1, %p1775_p2 }
 0x2ba   : > { %p1778_p6 = pnand %p1777_p4, %p1771_p3 }
 0x2bc   : > { %1781 = shalt.err (!%p1778_p6)
}
 0x2bd   : > { %1585 = dma.vmem_to_hbm [thread:$0]  (%p2024_p8), %s2661_s6, 32, %s2659_s1, %s1340_s16  }
 0x2be PF: > { %s1366_s9 = sand.u32 1, %s1824_s12   ;;  %p2740_p9 = scmp.ne.s32.totalorder %s2725_s23, 0 }
 0x2bf   : > { %p2741_p0 = scmp.ge.s32.totalorder %s1844_s17, 2  ;;  %s1367_s21 = scalar_lea.sflag [#allocation6], %s1366_s9 }
 0x2c1   : > { %p1599_p11 = pnand %p2741_p0, %p2740_p9 }
 0x2c3   : > { %1819 = dma.done.wait (!%p1599_p11), %s1367_s21, 32  }
 0x2c4   : > { %1821 = vsyncadd (!%p1599_p11), %s1367_s21, 4294967264  ;;  %s21_s17 = sadd.s32 1, %s1844_s17   ;;  %s2742_s15 = sld [smem:[#allocation16_spill]] }
 0x2c5   : > { %p18_p5 = scmp.ge.s32.totalorder %s21_s17, 4   ;;  %s2743_s16 = sld [smem:[#allocation17_spill]] }
 0x2c6   : > { %s2744_s12 = smov %s1828_s13  ;;  %s2745_s13 = smov %s1832_s14 }
 0x2c7   : > { %s2746_s14 = smov %s2030_s19  ;;  %20 = sbr.rel (!%p18_p5) target bundleno = 12 (0xc), region = 92 }
 0x2ce   :  { %1372 = vsyncpa [#allocation5], 1 }
 0x2cf   :  { %1374 = vsyncpa [#allocation5 + $0x1], 1 }
 0x2d0   :  { %1375 = vsyncpa [#allocation10], 1 }
 0x2d1   :  { %1377 = vsyncpa [#allocation10 + $0x1], 1 }
 0x2d2   :  { %1378 = vsyncpa [#allocation6], 1 }
 0x2d3   :  { %1380 = vsyncpa [#allocation6 + $0x1], 1 }
 0x2d4   :  { %1381 = vsyncpa [#allocation7], 1 }
 0x2d5   :  { %1383 = vsyncpa [#allocation7 + $0x1], 1 }

</bundles_post_ra>
